<compile_context>
chip_gen: v7x
topology: tpu7x:2x2x1
jax: 0.10.0
libtpu: 0.0.40
codegen_flags: <defaults>
</compile_context>

<pallas_src>
import functools
import math
import re

import jax
import jax.numpy as jnp
from jax.experimental import pallas as pl
from jax.experimental.pallas import tpu as pltpu


# ----------------------------------------------------------------------------
# Plain-JAX glue: spatio-temporal flatten/unflatten, time-only RoPE, nn.Linear
# ----------------------------------------------------------------------------
def flatten_spatiotemporal(x, num_timesteps):
    # [B*T, N, d] -> [B, T*N, d] (time-major: each group of N tokens shares t)
    BT, N, d = x.shape
    B = BT // num_timesteps
    return x.reshape(B, num_timesteps * N, d)


def unflatten_spatiotemporal(x, num_timesteps):
    # [B, T*N, d] -> [B*T, N, d]
    B, S, d = x.shape
    N = S // num_timesteps
    return x.reshape(B * num_timesteps, N, d)


def linear(x, w, b):
    # PyTorch nn.Linear: y = x @ W^T + b, W: [out, in]
    return jnp.dot(x, w.T) + b


def apply_time_only_rope_heads(x, num_nodes, num_timesteps, base=10000.0):
    # Reference (head-split) RoPE: x is [B, H, S, dh], faithful to the PyTorch fn.
    B, H, S, dh = x.shape
    assert S == num_nodes * num_timesteps
    half = dh // 2
    times = jnp.arange(num_timesteps, dtype=jnp.float32)[:, None]
    freqs = 1.0 / (base ** (2.0 * jnp.arange(half, dtype=jnp.float32) / dh))
    angle = times * freqs[None, :]                                     # [T, half]
    positions = jnp.repeat(jnp.arange(num_timesteps), num_nodes)       # [S]
    cosg = jnp.cos(angle)[positions]                                   # [S, half]
    sing = jnp.sin(angle)[positions]
    t1 = x[..., 0::2]
    t2 = x[..., 1::2]
    r0 = t1 * cosg - t2 * sing
    r1 = t1 * sing + t2 * cosg
    return jnp.stack([r0, r1], axis=-1).reshape(x.shape)


def apply_time_only_rope_folded(x, num_heads, num_nodes, num_timesteps, base=10000.0):
    # Same rotation but applied directly in the heads-folded [B, S, H*dh]
    # layout (no HBM transpose).  Equivalent to splitting heads, applying the
    # per-head RoPE and re-folding, because dh is even so the global even/odd
    # interleave matches the per-head interleave, and the cos/sin tables are
    # simply tiled across heads.
    B, S, d = x.shape
    assert S == num_nodes * num_timesteps
    dh = d // num_heads
    half = dh // 2
    times = jnp.arange(num_timesteps, dtype=jnp.float32)[:, None]
    freqs = 1.0 / (base ** (2.0 * jnp.arange(half, dtype=jnp.float32) / dh))
    angle = times * freqs[None, :]                                     # [T, half]
    positions = jnp.repeat(jnp.arange(num_timesteps), num_nodes)       # [S]
    cosg = jnp.tile(jnp.cos(angle)[positions], (1, num_heads))         # [S, d//2]
    sing = jnp.tile(jnp.sin(angle)[positions], (1, num_heads))
    t1 = x[..., 0::2]
    t2 = x[..., 1::2]
    r0 = t1 * cosg - t2 * sing
    r1 = t1 * sing + t2 * cosg
    return jnp.stack([r0, r1], axis=-1).reshape(x.shape)


# ----------------------------------------------------------------------------
# Chip / VMEM queries and footprint-aware tile selection
# ----------------------------------------------------------------------------
def _chip_generation():
    try:
        kind = jax.devices()[0].device_kind.lower()
    except Exception:
        return 0
    m = re.search(r"(\d+)", kind)
    return int(m.group(1)) if m else 0


def _vmem_capacity_bytes():
    try:
        return int(pltpu.get_tpu_info().vmem_capacity_bytes)
    except Exception:
        gen = _chip_generation()
        # v5e/v6e: 128 MiB per core; v7x: 64 MiB per TC; unknown -> conservative.
        return (128 if gen in (5, 6) else 64) * 1024 * 1024


def _pick_tiles(B, Sq, Sk, d, d_out, num_heads, vmem_cap):
    """Pick (tq, tk) maximizing Q residency under a VMEM footprint budget."""
    dh = d // num_heads
    lane = 128

    def footprint(tq, tk):
        q_in = 2 * tq * d * 2                           # Q block, dbl-buffered, bf16
        kv_in = 2 * 2 * tk * d * 2                      # K + V blocks
        w_in = 2 * d * d_out * 2                        # Wo chunk
        o_out = 2 * tq * d_out * 4                      # f32 output block
        q_scr = num_heads * tq * max(dh, lane) * 2      # head-split Q scratch
        ml_scr = 2 * num_heads * tq * lane * 4          # m, l scratch (lane-padded)
        a_scr = num_heads * tq * max(dh, lane) * 4      # P·V accumulator
        oa_scr = tq * d_out * 4                         # out-proj accumulator
        s_tmp = 2 * num_heads * tq * tk * 4             # score + prob transients
        return q_in + kv_in + w_in + o_out + q_scr + ml_scr + a_scr + oa_scr + s_tmp

    def candidates(n, cap):
        cands = set()
        if n <= cap:
            cands.add(n)
        t = (min(cap, n) // 8) * 8
        while t >= 8:
            if n % t == 0:
                cands.add(t)
            t -= 8
        if not cands:
            # TODO(synk): pad + mask ragged sequence lengths instead of a
            # monolithic block when n has no multiple-of-8 divisor.
            cands.add(n)
        return sorted(cands, reverse=True)

    budget = int(0.55 * vmem_cap)
    tq_cands = candidates(Sq, 1024)
    tk_cands = candidates(Sk, 2048)
    tq, tk = tq_cands[-1], tk_cands[-1]
    done = False
    for cq in tq_cands:                 # prioritize large tq (K/V re-stream ∝ Sq/tq)
        for ck in tk_cands:
            if footprint(cq, ck) <= budget:
                tq, tk = cq, ck
                done = True
                break
        if done:
            break
    # v7x megacore: if B == 1 make sure the q-tile (parallel) axis has >= 2 steps
    if B == 1 and Sq // tq < 2:
        for cq in tq_cands:
            if cq < Sq and footprint(cq, tk) <= budget:
                tq = cq
                break
    return tq, tk, footprint(tq, tk)


# ----------------------------------------------------------------------------
# Pallas kernel: grid = (B, Sq/tq, F, Sk/tk); F and Sk are reduction axes
# ----------------------------------------------------------------------------
def _split_heads(x2d, num_heads, dh):
    # [S, H*dh] -> [H, S, dh] via a leading-axis stack of static lane slices
    # (avoids 3-D transposes inside the kernel).
    return jnp.stack([x2d[:, h * dh:(h + 1) * dh] for h in range(num_heads)], axis=0)


def _fused_xattn_kernel(q_ref, k_ref, v_ref, w_ref, o_ref,
                        q_scr, m_scr, l_scr, acc_scr, out_scr,
                        *, num_heads, scale, use_bf16_exp):
    f = pl.program_id(2)
    ki = pl.program_id(3)
    n_f = pl.num_programs(2)
    n_k = pl.num_programs(3)

    H = num_heads
    tq, d = q_ref.shape[1], q_ref.shape[2]
    dh = d // H

    # --- per-(b, q-tile) init: out-proj accumulator + scaled, head-split Q ---
    @pl.when(jnp.logical_and(f == 0, ki == 0))
    def _():
        out_scr[...] = jnp.zeros(out_scr.shape, out_scr.dtype)
        q = q_ref[0] * scale                          # bf16 [tq, d], scale folded in
        q_scr[...] = _split_heads(q, H, dh)           # bf16 [H, tq, dh]

    # --- per-(b, q-tile, feature) init: online-softmax running state ---
    @pl.when(ki == 0)
    def _():
        m_scr[...] = jnp.full(m_scr.shape, -jnp.inf, m_scr.dtype)
        l_scr[...] = jnp.zeros(l_scr.shape, l_scr.dtype)
        acc_scr[...] = jnp.zeros(acc_scr.shape, acc_scr.dtype)

    kh = _split_heads(k_ref[0, 0], H, dh)             # bf16 [H, tk, dh]
    vh = _split_heads(v_ref[0, 0], H, dh)             # bf16 [H, tk, dh]

    # batched QK^T over heads, f32 accumulation on the MXU: [H, tq, tk]
    s = jnp.einsum("hqd,hkd->hqk", q_scr[...], kh,
                   preferred_element_type=jnp.float32)

    m_prev = m_scr[...]
    m_new = jnp.maximum(m_prev, jnp.max(s, axis=-1, keepdims=True))
    alpha = jnp.exp(m_prev - m_new)                   # [H, tq, 1] f32

    if use_bf16_exp:
        # v6e/v7x: bf16 EUP (~2x exp throughput); denominator kept in f32.
        p = jnp.exp((s - m_new).astype(jnp.bfloat16))                  # bf16
        l_add = jnp.sum(p.astype(jnp.float32), axis=-1, keepdims=True)
    else:
        # v5e and older: no bf16 EUP/VPU, keep exp in f32.
        p_f32 = jnp.exp(s - m_new)
        l_add = jnp.sum(p_f32, axis=-1, keepdims=True)
        p = p_f32.astype(jnp.bfloat16)

    l_scr[...] = alpha * l_scr[...] + l_add
    pv = jnp.einsum("hqk,hkd->hqd", p, vh,
                    preferred_element_type=jnp.float32)                # [H, tq, dh]
    acc_scr[...] = alpha * acc_scr[...] + pv
    m_scr[...] = m_new

    # --- per-(b, q-tile, feature) finalize: fold this feature's out-proj chunk ---
    @pl.when(ki == n_k - 1)
    def _():
        # approx reciprocal: inference-grade; use exact for training gradients.
        inv_l = pl.reciprocal(l_scr[...], approx=True)
        attn = (acc_scr[...] * inv_l).astype(jnp.bfloat16)             # [H, tq, dh]
        w = w_ref[0]                                                   # [d, d_out] bf16
        d_out = w.shape[-1]
        proj = jnp.zeros((tq, d_out), jnp.float32)
        # concat-over-heads folded into the projection: sum of per-head matmuls
        for h in range(H):
            proj = proj + jnp.dot(attn[h], w[h * dh:(h + 1) * dh, :],
                                  preferred_element_type=jnp.float32)
        out_scr[...] += proj

    # --- per-(b, q-tile) finalize: single lane-dense store of the projected output ---
    @pl.when(jnp.logical_and(f == n_f - 1, ki == n_k - 1))
    def _():
        o_ref[0] = out_scr[...].astype(o_ref.dtype)


def fused_pallas_attention(Q, K, V, Wo_t, *, num_heads):
    """Q: [B, Sq, d]; K, V: [F, B, Sk, d]; Wo_t: [F, d, d_out] -> [B, Sq, d_out] (f32).

    Single pallas_call: attention over all features/heads with online softmax
    over Sk tiles, plus the output projection accumulated over F inside the
    kernel (no [F, B, Sq, d] HBM intermediate)."""
    B, Sq, d = Q.shape
    F, _, Sk, _ = K.shape
    d_out = Wo_t.shape[-1]
    H = num_heads
    dh = d // H
    scale = 1.0 / math.sqrt(dh)

    vmem_cap = _vmem_capacity_bytes()
    tq, tk, fp = _pick_tiles(B, Sq, Sk, d, d_out, H, vmem_cap)
    n_q, n_k = Sq // tq, Sk // tk
    use_bf16_exp = _chip_generation() >= 6     # bf16 EUP only on v6e/v7x

    Qb = Q.astype(jnp.bfloat16)
    Kb = K.astype(jnp.bfloat16)
    Vb = V.astype(jnp.bfloat16)
    Wb = Wo_t.astype(jnp.bfloat16)

    # Advisory cost estimate matching the actual DMA pattern.
    flops = 4 * F * B * H * Sq * Sk * dh + 2 * F * B * Sq * d * d_out
    transcendentals = F * B * H * Sq * (Sk + n_k)
    bytes_accessed = (B * Sq * d * 2                      # Q: once per (b, q-tile)
                      + 2 * B * n_q * F * Sk * d * 2      # K+V: re-streamed per q-tile
                      + B * n_q * F * d * d_out * 2       # Wo chunks
                      + B * Sq * d_out * 4)               # single f32 output write
    cost = pl.CostEstimate(flops=flops, transcendentals=transcendentals,
                           bytes_accessed=bytes_accessed)

    # Footprint-derived scoped-VMEM limit with headroom, clamped to the chip.
    vmem_limit = int(min(0.8 * vmem_cap, max(4 * fp, 32 * 1024 * 1024)))

    kernel = functools.partial(_fused_xattn_kernel, num_heads=H, scale=scale,
                               use_bf16_exp=use_bf16_exp)

    return pl.pallas_call(
        kernel,
        out_shape=jax.ShapeDtypeStruct((B, Sq, d_out), jnp.float32),
        grid_spec=pltpu.PrefetchScalarGridSpec(
            num_scalar_prefetch=0,
            grid=(B, n_q, F, n_k),          # F and Sk innermost: reduction axes
            in_specs=[
                pl.BlockSpec((1, tq, d), lambda b, qi, f, ki: (b, qi, 0)),
                pl.BlockSpec((1, 1, tk, d), lambda b, qi, f, ki: (f, b, ki, 0)),
                pl.BlockSpec((1, 1, tk, d), lambda b, qi, f, ki: (f, b, ki, 0)),
                pl.BlockSpec((1, d, d_out), lambda b, qi, f, ki: (f, 0, 0)),
            ],
            out_specs=pl.BlockSpec((1, tq, d_out), lambda b, qi, f, ki: (b, qi, 0)),
            scratch_shapes=[
                pltpu.VMEM((H, tq, dh), jnp.bfloat16),   # scaled, head-split Q
                pltpu.VMEM((H, tq, 1), jnp.float32),     # running max m
                pltpu.VMEM((H, tq, 1), jnp.float32),     # running denom l
                pltpu.VMEM((H, tq, dh), jnp.float32),    # running P·V accumulator
                pltpu.VMEM((tq, d_out), jnp.float32),    # out-projection accumulator
            ],
        ),
        compiler_params=pltpu.CompilerParams(
            dimension_semantics=("parallel", "parallel", "arbitrary", "arbitrary"),
            vmem_limit_bytes=vmem_limit,
        ),
        cost_estimate=cost,
    )(Qb, Kb, Vb, Wb)


# ----------------------------------------------------------------------------
# Full module forward (Pallas-accelerated)
# ----------------------------------------------------------------------------
def quadratic_hetero_cross_attention(batch, q_data, params, *, num_heads,
                                     num_timesteps, rope_on=True,
                                     aggregator="concat"):
    x0 = batch["x_0"]
    edge_attr = batch["edge_attr"]
    hetero_features = [x0, edge_attr]
    nF = len(hetero_features)
    BT, N, d = x0.shape
    H = num_heads

    # Q projection + RoPE, heads kept folded (no HBM transpose).
    q_flat = flatten_spatiotemporal(q_data, num_timesteps)          # [B, Sq, d]
    Q = linear(q_flat, params["Wq"], params["bq"])
    if rope_on:
        Q = apply_time_only_rope_folded(Q, H, N, num_timesteps)

    Ks, Vs = [], []
    for i in range(nF):
        feat = hetero_features[i]
        N_or_E = feat.shape[1]
        ff = flatten_spatiotemporal(feat, num_timesteps)            # [B, Sk_i, d]
        K_i = linear(ff, params["Wk"][i], params["bk"][i])
        V_i = linear(ff, params["Wv"][i], params["bv"][i])
        if rope_on:
            K_i = apply_time_only_rope_folded(K_i, H, N_or_E, num_timesteps)
        Ks.append(K_i)
        Vs.append(V_i)

    # Per-feature out-projection chunks (concat folds into a sum of per-feature
    # projections; 'sum' aggregator uses the same Wo for every feature).
    d_out = params["Wo"].shape[0]
    if aggregator == "concat":
        Wo_t = params["Wo"].T.reshape(nF, d, d_out)                 # chunk f = Wo[:, f*d:(f+1)*d].T
    elif aggregator == "sum":
        Wo_t = jnp.broadcast_to(params["Wo"].T[None], (nF, d, d_out))
    else:
        raise ValueError("aggregator must be 'sum' or 'concat'")

    if len({k.shape[1] for k in Ks}) == 1:
        out = fused_pallas_attention(Q, jnp.stack(Ks), jnp.stack(Vs), Wo_t,
                                     num_heads=H)                   # [B, Sq, d_out]
    else:
        # Ragged key lengths: one call per feature; projected contributions sum.
        out = sum(fused_pallas_attention(Q, K_i[None], V_i[None], Wo_t[i:i + 1],
                                         num_heads=H)
                  for i, (K_i, V_i) in enumerate(zip(Ks, Vs)))

    out = out + params["bo"]
    out = unflatten_spatiotemporal(out, num_timesteps)              # [B*T, N, d]
    new_batch = dict(batch)
    new_batch["x_0"] = out
    return new_batch


# ----------------------------------------------------------------------------
# Plain-JAX reference (head-split, f32) — faithful to the PyTorch module
# ----------------------------------------------------------------------------
def reference_forward(batch, q_data, params, *, num_heads, num_timesteps,
                      rope_on=True, aggregator="concat"):
    x0 = batch["x_0"]
    edge_attr = batch["edge_attr"]
    hetero = [x0, edge_attr]
    BT, N, d = x0.shape
    B = BT // num_timesteps
    H = num_heads
    dh = d // H

    q_flat = flatten_spatiotemporal(q_data, num_timesteps)
    Sq = q_flat.shape[1]
    Q = linear(q_flat, params["Wq"], params["bq"]).reshape(B, Sq, H, dh).transpose(0, 2, 1, 3)
    if rope_on:
        Q = apply_time_only_rope_heads(Q, N, num_timesteps)

    outs = []
    for i, feat in enumerate(hetero):
        N_or_E = feat.shape[1]
        ff = flatten_spatiotemporal(feat, num_timesteps)
        Sk = ff.shape[1]
        K = linear(ff, params["Wk"][i], params["bk"][i]).reshape(B, Sk, H, dh).transpose(0, 2, 1, 3)
        V = linear(ff, params["Wv"][i], params["bv"][i]).reshape(B, Sk, H, dh).transpose(0, 2, 1, 3)
        if rope_on:
            K = apply_time_only_rope_heads(K, N_or_E, num_timesteps)
        s = jnp.einsum("bhqd,bhkd->bhqk", Q, K) / math.sqrt(dh)
        w = jax.nn.softmax(s, axis=-1)
        o = jnp.einsum("bhqk,bhkd->bhqd", w, V)
        outs.append(o.transpose(0, 2, 1, 3).reshape(B, Sq, d))

    if aggregator == "sum":
        combined = sum(outs)
    else:
        combined = jnp.concatenate(outs, axis=-1)
    out = linear(combined, params["Wo"], params["bo"])
    return unflatten_spatiotemporal(out, num_timesteps)


# ----------------------------------------------------------------------------
# Deterministic parameter construction (synthetic; no checkpoint load)
# ----------------------------------------------------------------------------
def make_params(key, num_hetero_feats, lifting_dim, aggregator="concat"):
    d = lifting_dim
    keys = jax.random.split(key, 4 + 4 * num_hetero_feats)
    s = 1.0 / math.sqrt(d)
    params = {
        "Wq": jax.random.uniform(keys[0], (d, d), jnp.float32, -s, s),
        "bq": jax.random.uniform(keys[1], (d,), jnp.float32, -s, s),
        "Wk": [], "bk": [], "Wv": [], "bv": [],
    }
    for i in range(num_hetero_feats):
        params["Wk"].append(jax.random.uniform(keys[4 + 4 * i + 0], (d, d), jnp.float32, -s, s))
        params["bk"].append(jax.random.uniform(keys[4 + 4 * i + 1], (d,), jnp.float32, -s, s))
        params["Wv"].append(jax.random.uniform(keys[4 + 4 * i + 2], (d, d), jnp.float32, -s, s))
        params["bv"].append(jax.random.uniform(keys[4 + 4 * i + 3], (d,), jnp.float32, -s, s))
    in_dim = d if aggregator == "sum" else num_hetero_feats * d
    so = 1.0 / math.sqrt(in_dim)
    params["Wo"] = jax.random.uniform(keys[2], (d, in_dim), jnp.float32, -so, so)
    params["bo"] = jax.random.uniform(keys[3], (d,), jnp.float32, -so, so)
    return params


if __name__ == "__main__":
    # small shapes: B=2, T=4, N=E=8, lifting_dim=32, heads=4 (d_head=8)
    B, T, N, E, d, H = 2, 4, 8, 8, 32, 4
    nF = 2  # num_hetero_feats
    key = jax.random.PRNGKey(0)
    k_params, k_x0, k_ea, k_q = jax.random.split(key, 4)

    params = make_params(k_params, nF, d, aggregator="concat")

    batch = {
        "x_0": jax.random.normal(k_x0, (B * T, N, d), jnp.float32),
        "edge_attr": jax.random.normal(k_ea, (B * T, E, d), jnp.float32),
    }
    # trunk_len must equal N for the time-only RoPE assertion to hold
    q_data = jax.random.normal(k_q, (B * T, N, d), jnp.float32)

    out = quadratic_hetero_cross_attention(
        batch, q_data, params, num_heads=H, num_timesteps=T,
        rope_on=True, aggregator="concat")
    out_x0 = jax.block_until_ready(out["x_0"])

    ref = reference_forward(
        batch, q_data, params, num_heads=H, num_timesteps=T,
        rope_on=True, aggregator="concat")
    ref = jax.block_until_ready(ref)

    assert out_x0.shape == (B * T, N, d)
    # bf16 matmuls + bf16 out-proj + approx reciprocal => loosened tolerance
    if not jnp.allclose(out_x0, ref, atol=5e-2, rtol=5e-2):
        max_err = float(jnp.max(jnp.abs(out_x0 - ref)))
        raise AssertionError(f"Pallas forward mismatch vs reference (max abs err {max_err})")

    print("KERNEL_OK")
</pallas_src>

<mosaic_0001>
module attributes {stable_mosaic.version = 11 : i64} {
  func.func @_fused_xattn_kernel(%arg0: i32, %arg1: i32, %arg2: i32, %arg3: i32, %arg4: memref<1x32x32xbf16, #tpu.memory_space<vmem>>, %arg5: memref<1x1x32x32xbf16, #tpu.memory_space<vmem>>, %arg6: memref<1x1x32x32xbf16, #tpu.memory_space<vmem>>, %arg7: memref<1x32x32xbf16, #tpu.memory_space<vmem>>, %arg8: memref<1x32x32xf32, #tpu.memory_space<vmem>>, %arg9: memref<4x32x8xbf16, #tpu.memory_space<vmem>>, %arg10: memref<4x32x1xf32, #tpu.memory_space<vmem>>, %arg11: memref<4x32x1xf32, #tpu.memory_space<vmem>>, %arg12: memref<4x32x8xf32, #tpu.memory_space<vmem>>, %arg13: memref<32x32xf32, #tpu.memory_space<vmem>>) attributes {dimension_semantics = [#tpu.dimension_semantics<parallel>, #tpu.dimension_semantics<parallel>, #tpu.dimension_semantics<arbitrary>, #tpu.dimension_semantics<arbitrary>], iteration_bounds = array<i64: 2, 1, 2, 1>, scalar_prefetch = 0 : i64, scratch_operands = 5 : i64, tpu.core_type = #tpu.core_type<tc>, window_params = [{transform_indices = @transform_0, window_bounds = array<i64: 1, 32, 32>}, {transform_indices = @transform_1, window_bounds = array<i64: 1, 1, 32, 32>}, {transform_indices = @transform_2, window_bounds = array<i64: 1, 1, 32, 32>}, {transform_indices = @transform_3, window_bounds = array<i64: 1, 32, 32>}, {transform_indices = @transform_4, window_bounds = array<i64: 1, 32, 32>}]} {
    %c0_i32 = arith.constant 0 : i32
    %0 = arith.cmpi eq, %arg2, %c0_i32 : i32
    %c0_i32_0 = arith.constant 0 : i32
    %1 = arith.cmpi eq, %arg3, %c0_i32_0 : i32
    %2 = arith.andi %0, %1 : i1
    %3 = arith.extui %2 : i1 to i32
    %c0_i32_1 = arith.constant 0 : i32
    %4 = arith.cmpi ne, %3, %c0_i32_1 : i32
    scf.if %4 {
      %cst_39 = arith.constant 0.000000e+00 : f32
      %63 = vector.broadcast %cst_39 : f32 to vector<32x32xf32>
      %c0_40 = arith.constant 0 : index
      %c0_41 = arith.constant 0 : index
      %64 = vector.load %arg13[%c0_40, %c0_41] : memref<32x32xf32, #tpu.memory_space<vmem>>, vector<32x32xf32>
      tpu.vector_store %arg13[%c0_40, %c0_41], %63 {strides = array<i32>} : memref<32x32xf32, #tpu.memory_space<vmem>>, vector<32x32xf32>,
      %c0_42 = arith.constant 0 : index
      %c0_43 = arith.constant 0 : index
      %c0_44 = arith.constant 0 : index
      %65 = vector.load %arg4[%c0_42, %c0_43, %c0_44] : memref<1x32x32xbf16, #tpu.memory_space<vmem>>, vector<1x32x32xbf16>
      %66 = vector.shape_cast %65 : vector<1x32x32xbf16> to vector<32x32xbf16>
      %cst_45 = arith.constant 3.535160e-01 : bf16
      %67 = vector.broadcast %cst_45 : bf16 to vector<32x32xbf16>
      %68 = arith.mulf %66, %67 : vector<32x32xbf16>
      %69 = vector.extract_strided_slice %68 {offsets = [0, 0], sizes = [32, 8], strides = [1, 1]} : vector<32x32xbf16> to vector<32x8xbf16>
      %70 = vector.extract_strided_slice %68 {offsets = [0, 8], sizes = [32, 8], strides = [1, 1]} : vector<32x32xbf16> to vector<32x8xbf16>
      %71 = vector.extract_strided_slice %68 {offsets = [0, 16], sizes = [32, 8], strides = [1, 1]} : vector<32x32xbf16> to vector<32x8xbf16>
      %72 = vector.extract_strided_slice %68 {offsets = [0, 24], sizes = [32, 8], strides = [1, 1]} : vector<32x32xbf16> to vector<32x8xbf16>
      %73 = vector.shape_cast %69 : vector<32x8xbf16> to vector<1x32x8xbf16>
      %74 = vector.shape_cast %70 : vector<32x8xbf16> to vector<1x32x8xbf16>
      %75 = vector.shape_cast %71 : vector<32x8xbf16> to vector<1x32x8xbf16>
      %76 = vector.shape_cast %72 : vector<32x8xbf16> to vector<1x32x8xbf16>
      %77 = tpu.concatenate %73, %74, %75, %76 in 0 : vector<1x32x8xbf16>, vector<1x32x8xbf16>, vector<1x32x8xbf16>, vector<1x32x8xbf16> -> vector<4x32x8xbf16>
      %c0_46 = arith.constant 0 : index
      %c0_47 = arith.constant 0 : index
      %c0_48 = arith.constant 0 : index
      %78 = vector.load %arg9[%c0_46, %c0_47, %c0_48] : memref<4x32x8xbf16, #tpu.memory_space<vmem>>, vector<4x32x8xbf16>
      tpu.vector_store %arg9[%c0_46, %c0_47, %c0_48], %77 {strides = array<i32>} : memref<4x32x8xbf16, #tpu.memory_space<vmem>>, vector<4x32x8xbf16>,
    } else {
    }
    %c0_i32_2 = arith.constant 0 : i32
    %5 = arith.cmpi eq, %arg3, %c0_i32_2 : i32
    %6 = arith.extui %5 : i1 to i32
    %c0_i32_3 = arith.constant 0 : i32
    %7 = arith.cmpi ne, %6, %c0_i32_3 : i32
    scf.if %7 {
      %cst_39 = arith.constant 0xFF800000 : f32
      %63 = vector.broadcast %cst_39 : f32 to vector<4x32x1xf32>
      %c0_40 = arith.constant 0 : index
      %c0_41 = arith.constant 0 : index
      %c0_42 = arith.constant 0 : index
      %64 = vector.load %arg10[%c0_40, %c0_41, %c0_42] : memref<4x32x1xf32, #tpu.memory_space<vmem>>, vector<4x32x1xf32>
      tpu.vector_store %arg10[%c0_40, %c0_41, %c0_42], %63 {strides = array<i32>} : memref<4x32x1xf32, #tpu.memory_space<vmem>>, vector<4x32x1xf32>,
      %cst_43 = arith.constant 0.000000e+00 : f32
      %65 = vector.broadcast %cst_43 : f32 to vector<4x32x1xf32>
      %c0_44 = arith.constant 0 : index
      %c0_45 = arith.constant 0 : index
      %c0_46 = arith.constant 0 : index
      %66 = vector.load %arg11[%c0_44, %c0_45, %c0_46] : memref<4x32x1xf32, #tpu.memory_space<vmem>>, vector<4x32x1xf32>
      tpu.vector_store %arg11[%c0_44, %c0_45, %c0_46], %65 {strides = array<i32>} : memref<4x32x1xf32, #tpu.memory_space<vmem>>, vector<4x32x1xf32>,
      %cst_47 = arith.constant 0.000000e+00 : f32
      %67 = vector.broadcast %cst_47 : f32 to vector<4x32x8xf32>
      %c0_48 = arith.constant 0 : index
      %c0_49 = arith.constant 0 : index
      %c0_50 = arith.constant 0 : index
      %68 = vector.load %arg12[%c0_48, %c0_49, %c0_50] : memref<4x32x8xf32, #tpu.memory_space<vmem>>, vector<4x32x8xf32>
      tpu.vector_store %arg12[%c0_48, %c0_49, %c0_50], %67 {strides = array<i32>} : memref<4x32x8xf32, #tpu.memory_space<vmem>>, vector<4x32x8xf32>,
    } else {
    }
    %c0 = arith.constant 0 : index
    %c0_4 = arith.constant 0 : index
    %c0_5 = arith.constant 0 : index
    %c0_6 = arith.constant 0 : index
    %8 = vector.load %arg5[%c0, %c0_4, %c0_5, %c0_6] : memref<1x1x32x32xbf16, #tpu.memory_space<vmem>>, vector<1x1x32x32xbf16>
    %9 = vector.shape_cast %8 : vector<1x1x32x32xbf16> to vector<32x32xbf16>
    %10 = vector.extract_strided_slice %9 {offsets = [0, 0], sizes = [32, 8], strides = [1, 1]} : vector<32x32xbf16> to vector<32x8xbf16>
    %11 = vector.extract_strided_slice %9 {offsets = [0, 8], sizes = [32, 8], strides = [1, 1]} : vector<32x32xbf16> to vector<32x8xbf16>
    %12 = vector.extract_strided_slice %9 {offsets = [0, 16], sizes = [32, 8], strides = [1, 1]} : vector<32x32xbf16> to vector<32x8xbf16>
    %13 = vector.extract_strided_slice %9 {offsets = [0, 24], sizes = [32, 8], strides = [1, 1]} : vector<32x32xbf16> to vector<32x8xbf16>
    %14 = vector.shape_cast %10 : vector<32x8xbf16> to vector<1x32x8xbf16>
    %15 = vector.shape_cast %11 : vector<32x8xbf16> to vector<1x32x8xbf16>
    %16 = vector.shape_cast %12 : vector<32x8xbf16> to vector<1x32x8xbf16>
    %17 = vector.shape_cast %13 : vector<32x8xbf16> to vector<1x32x8xbf16>
    %18 = tpu.concatenate %14, %15, %16, %17 in 0 : vector<1x32x8xbf16>, vector<1x32x8xbf16>, vector<1x32x8xbf16>, vector<1x32x8xbf16> -> vector<4x32x8xbf16>
    %c0_7 = arith.constant 0 : index
    %c0_8 = arith.constant 0 : index
    %c0_9 = arith.constant 0 : index
    %c0_10 = arith.constant 0 : index
    %19 = vector.load %arg6[%c0_7, %c0_8, %c0_9, %c0_10] : memref<1x1x32x32xbf16, #tpu.memory_space<vmem>>, vector<1x1x32x32xbf16>
    %20 = vector.shape_cast %19 : vector<1x1x32x32xbf16> to vector<32x32xbf16>
    %21 = vector.extract_strided_slice %20 {offsets = [0, 0], sizes = [32, 8], strides = [1, 1]} : vector<32x32xbf16> to vector<32x8xbf16>
    %22 = vector.extract_strided_slice %20 {offsets = [0, 8], sizes = [32, 8], strides = [1, 1]} : vector<32x32xbf16> to vector<32x8xbf16>
    %23 = vector.extract_strided_slice %20 {offsets = [0, 16], sizes = [32, 8], strides = [1, 1]} : vector<32x32xbf16> to vector<32x8xbf16>
    %24 = vector.extract_strided_slice %20 {offsets = [0, 24], sizes = [32, 8], strides = [1, 1]} : vector<32x32xbf16> to vector<32x8xbf16>
    %25 = vector.shape_cast %21 : vector<32x8xbf16> to vector<1x32x8xbf16>
    %26 = vector.shape_cast %22 : vector<32x8xbf16> to vector<1x32x8xbf16>
    %27 = vector.shape_cast %23 : vector<32x8xbf16> to vector<1x32x8xbf16>
    %28 = vector.shape_cast %24 : vector<32x8xbf16> to vector<1x32x8xbf16>
    %29 = tpu.concatenate %25, %26, %27, %28 in 0 : vector<1x32x8xbf16>, vector<1x32x8xbf16>, vector<1x32x8xbf16>, vector<1x32x8xbf16> -> vector<4x32x8xbf16>
    %c0_11 = arith.constant 0 : index
    %c0_12 = arith.constant 0 : index
    %c0_13 = arith.constant 0 : index
    %30 = vector.load %arg9[%c0_11, %c0_12, %c0_13] : memref<4x32x8xbf16, #tpu.memory_space<vmem>>, vector<4x32x8xbf16>
    "tpu.trace_start"() <{level = 10 : i32, message = "hqd,hkd->hqk"}> : () -> ()
    %cst = arith.constant dense<0.000000e+00> : vector<4x32x32xf32>
    %31 = tpu.matmul %30, %18, %cst {dimension_numbers = #tpu.dot_dimension_numbers<[2], [2], [1], [1], [0, 0, 0, 1, 1, 1], [0], [0]>} : vector<4x32x8xbf16>, vector<4x32x8xbf16>, vector<4x32x32xf32> -> vector<4x32x32xf32>
    "tpu.trace_stop"() : () -> ()
    %c0_14 = arith.constant 0 : index
    %c0_15 = arith.constant 0 : index
    %c0_16 = arith.constant 0 : index
    %32 = vector.load %arg10[%c0_14, %c0_15, %c0_16] : memref<4x32x1xf32, #tpu.memory_space<vmem>>, vector<4x32x1xf32>
    %cst_17 = arith.constant dense<0xFF800000> : vector<4x32xf32>
    %33 = vector.multi_reduction <maximumf>, %31, %cst_17 [2] : vector<4x32x32xf32> to vector<4x32xf32>
    %34 = vector.shape_cast %33 : vector<4x32xf32> to vector<4x32x1xf32>
    %35 = arith.maximumf %32, %34 : vector<4x32x1xf32>
    %36 = arith.subf %32, %35 : vector<4x32x1xf32>
    %37 = math.exp %36 : vector<4x32x1xf32>
    %38 = vector.broadcast %35 : vector<4x32x1xf32> to vector<4x32x32xf32>
    %39 = arith.subf %31, %38 : vector<4x32x32xf32>
    %40 = math.exp %39 : vector<4x32x32xf32>
    %cst_18 = arith.constant dense<0.000000e+00> : vector<4x32xf32>
    %41 = vector.multi_reduction <add>, %40, %cst_18 [2] : vector<4x32x32xf32> to vector<4x32xf32>
    %42 = vector.shape_cast %41 : vector<4x32xf32> to vector<4x32x1xf32>
    %43 = arith.truncf %40 : vector<4x32x32xf32> to vector<4x32x32xbf16>
    %c0_19 = arith.constant 0 : index
    %c0_20 = arith.constant 0 : index
    %c0_21 = arith.constant 0 : index
    %44 = vector.load %arg11[%c0_19, %c0_20, %c0_21] : memref<4x32x1xf32, #tpu.memory_space<vmem>>, vector<4x32x1xf32>
    %45 = arith.mulf %37, %44 : vector<4x32x1xf32>
    %46 = arith.addf %45, %42 : vector<4x32x1xf32>
    %c0_22 = arith.constant 0 : index
    %c0_23 = arith.constant 0 : index
    %c0_24 = arith.constant 0 : index
    %47 = vector.load %arg11[%c0_22, %c0_23, %c0_24] : memref<4x32x1xf32, #tpu.memory_space<vmem>>, vector<4x32x1xf32>
    tpu.vector_store %arg11[%c0_22, %c0_23, %c0_24], %46 {strides = array<i32>} : memref<4x32x1xf32, #tpu.memory_space<vmem>>, vector<4x32x1xf32>,
    "tpu.trace_start"() <{level = 10 : i32, message = "hqk,hkd->hqd"}> : () -> ()
    %cst_25 = arith.constant dense<0.000000e+00> : vector<4x32x8xf32>
    %48 = tpu.matmul %43, %29, %cst_25 {dimension_numbers = #tpu.dot_dimension_numbers<[2], [1], [1], [2], [0, 0, 0, 1, 1, 2], [0], [0]>} : vector<4x32x32xbf16>, vector<4x32x8xbf16>, vector<4x32x8xf32> -> vector<4x32x8xf32>
    "tpu.trace_stop"() : () -> ()
    %c0_26 = arith.constant 0 : index
    %c0_27 = arith.constant 0 : index
    %c0_28 = arith.constant 0 : index
    %49 = vector.load %arg12[%c0_26, %c0_27, %c0_28] : memref<4x32x8xf32, #tpu.memory_space<vmem>>, vector<4x32x8xf32>
    %50 = vector.broadcast %37 : vector<4x32x1xf32> to vector<4x32x8xf32>
    %51 = arith.mulf %50, %49 : vector<4x32x8xf32>
    %52 = arith.addf %51, %48 : vector<4x32x8xf32>
    %c0_29 = arith.constant 0 : index
    %c0_30 = arith.constant 0 : index
    %c0_31 = arith.constant 0 : index
    %53 = vector.load %arg12[%c0_29, %c0_30, %c0_31] : memref<4x32x8xf32, #tpu.memory_space<vmem>>, vector<4x32x8xf32>
    tpu.vector_store %arg12[%c0_29, %c0_30, %c0_31], %52 {strides = array<i32>} : memref<4x32x8xf32, #tpu.memory_space<vmem>>, vector<4x32x8xf32>,
    %c0_32 = arith.constant 0 : index
    %c0_33 = arith.constant 0 : index
    %c0_34 = arith.constant 0 : index
    %54 = vector.load %arg10[%c0_32, %c0_33, %c0_34] : memref<4x32x1xf32, #tpu.memory_space<vmem>>, vector<4x32x1xf32>
    tpu.vector_store %arg10[%c0_32, %c0_33, %c0_34], %35 {strides = array<i32>} : memref<4x32x1xf32, #tpu.memory_space<vmem>>, vector<4x32x1xf32>,
    %c0_i32_35 = arith.constant 0 : i32
    %55 = arith.cmpi eq, %arg3, %c0_i32_35 : i32
    %56 = arith.extui %55 : i1 to i32
    %c0_i32_36 = arith.constant 0 : i32
    %57 = arith.cmpi ne, %56, %c0_i32_36 : i32
    scf.if %57 {
      %c0_39 = arith.constant 0 : index
      %c0_40 = arith.constant 0 : index
      %c0_41 = arith.constant 0 : index
      %63 = vector.load %arg11[%c0_39, %c0_40, %c0_41] : memref<4x32x1xf32, #tpu.memory_space<vmem>>, vector<4x32x1xf32>
      %64 = tpu.reciprocal %63 {approx = true} : vector<4x32x1xf32> -> vector<4x32x1xf32>
      %c0_42 = arith.constant 0 : index
      %c0_43 = arith.constant 0 : index
      %c0_44 = arith.constant 0 : index
      %65 = vector.load %arg12[%c0_42, %c0_43, %c0_44] : memref<4x32x8xf32, #tpu.memory_space<vmem>>, vector<4x32x8xf32>
      %66 = vector.broadcast %64 : vector<4x32x1xf32> to vector<4x32x8xf32>
      %67 = arith.mulf %65, %66 : vector<4x32x8xf32>
      %68 = arith.truncf %67 : vector<4x32x8xf32> to vector<4x32x8xbf16>
      %c0_45 = arith.constant 0 : index
      %c0_46 = arith.constant 0 : index
      %c0_47 = arith.constant 0 : index
      %69 = vector.load %arg7[%c0_45, %c0_46, %c0_47] : memref<1x32x32xbf16, #tpu.memory_space<vmem>>, vector<1x32x32xbf16>
      %70 = vector.shape_cast %69 : vector<1x32x32xbf16> to vector<32x32xbf16>
      %cst_48 = arith.constant 0.000000e+00 : f32
      %71 = vector.broadcast %cst_48 : f32 to vector<32x32xf32>
      %72 = vector.extract_strided_slice %68 {offsets = [0, 0, 0], sizes = [1, 32, 8], strides = [1, 1, 1]} : vector<4x32x8xbf16> to vector<1x32x8xbf16>
      %73 = vector.shape_cast %72 : vector<1x32x8xbf16> to vector<32x8xbf16>
      %74 = vector.extract_strided_slice %70 {offsets = [0, 0], sizes = [8, 32], strides = [1, 1]} : vector<32x32xbf16> to vector<8x32xbf16>
      %cst_49 = arith.constant dense<0.000000e+00> : vector<32x32xf32>
      %75 = tpu.matmul %73, %74, %cst_49 {dimension_numbers = #tpu.dot_dimension_numbers<[1], [0], [0], [1], [0, 0, 1, 1], [], []>} : vector<32x8xbf16>, vector<8x32xbf16>, vector<32x32xf32> -> vector<32x32xf32>
      %76 = arith.addf %71, %75 : vector<32x32xf32>
      %77 = vector.extract_strided_slice %68 {offsets = [1, 0, 0], sizes = [1, 32, 8], strides = [1, 1, 1]} : vector<4x32x8xbf16> to vector<1x32x8xbf16>
      %78 = vector.shape_cast %77 : vector<1x32x8xbf16> to vector<32x8xbf16>
      %79 = vector.extract_strided_slice %70 {offsets = [8, 0], sizes = [8, 32], strides = [1, 1]} : vector<32x32xbf16> to vector<8x32xbf16>
      %cst_50 = arith.constant dense<0.000000e+00> : vector<32x32xf32>
      %80 = tpu.matmul %78, %79, %cst_50 {dimension_numbers = #tpu.dot_dimension_numbers<[1], [0], [0], [1], [0, 0, 1, 1], [], []>} : vector<32x8xbf16>, vector<8x32xbf16>, vector<32x32xf32> -> vector<32x32xf32>
      %81 = arith.addf %76, %80 : vector<32x32xf32>
      %82 = vector.extract_strided_slice %68 {offsets = [2, 0, 0], sizes = [1, 32, 8], strides = [1, 1, 1]} : vector<4x32x8xbf16> to vector<1x32x8xbf16>
      %83 = vector.shape_cast %82 : vector<1x32x8xbf16> to vector<32x8xbf16>
      %84 = vector.extract_strided_slice %70 {offsets = [16, 0], sizes = [8, 32], strides = [1, 1]} : vector<32x32xbf16> to vector<8x32xbf16>
      %cst_51 = arith.constant dense<0.000000e+00> : vector<32x32xf32>
      %85 = tpu.matmul %83, %84, %cst_51 {dimension_numbers = #tpu.dot_dimension_numbers<[1], [0], [0], [1], [0, 0, 1, 1], [], []>} : vector<32x8xbf16>, vector<8x32xbf16>, vector<32x32xf32> -> vector<32x32xf32>
      %86 = arith.addf %81, %85 : vector<32x32xf32>
      %87 = vector.extract_strided_slice %68 {offsets = [3, 0, 0], sizes = [1, 32, 8], strides = [1, 1, 1]} : vector<4x32x8xbf16> to vector<1x32x8xbf16>
      %88 = vector.shape_cast %87 : vector<1x32x8xbf16> to vector<32x8xbf16>
      %89 = vector.extract_strided_slice %70 {offsets = [24, 0], sizes = [8, 32], strides = [1, 1]} : vector<32x32xbf16> to vector<8x32xbf16>
      %cst_52 = arith.constant dense<0.000000e+00> : vector<32x32xf32>
      %90 = tpu.matmul %88, %89, %cst_52 {dimension_numbers = #tpu.dot_dimension_numbers<[1], [0], [0], [1], [0, 0, 1, 1], [], []>} : vector<32x8xbf16>, vector<8x32xbf16>, vector<32x32xf32> -> vector<32x32xf32>
      %91 = arith.addf %86, %90 : vector<32x32xf32>
      %c0_53 = arith.constant 0 : index
      %c0_54 = arith.constant 0 : index
      %92 = vector.load %arg13[%c0_53, %c0_54] : memref<32x32xf32, #tpu.memory_space<vmem>>, vector<32x32xf32>
      %93 = arith.addf %92, %91 : vector<32x32xf32>
      %c0_55 = arith.constant 0 : index
      %c0_56 = arith.constant 0 : index
      %94 = vector.load %arg13[%c0_55, %c0_56] : memref<32x32xf32, #tpu.memory_space<vmem>>, vector<32x32xf32>
      tpu.vector_store %arg13[%c0_55, %c0_56], %93 {strides = array<i32>} : memref<32x32xf32, #tpu.memory_space<vmem>>, vector<32x32xf32>,
    } else {
    }
    %c1_i32 = arith.constant 1 : i32
    %58 = arith.cmpi eq, %arg2, %c1_i32 : i32
    %c0_i32_37 = arith.constant 0 : i32
    %59 = arith.cmpi eq, %arg3, %c0_i32_37 : i32
    %60 = arith.andi %58, %59 : i1
    %61 = arith.extui %60 : i1 to i32
    %c0_i32_38 = arith.constant 0 : i32
    %62 = arith.cmpi ne, %61, %c0_i32_38 : i32
    scf.if %62 {
      %c0_39 = arith.constant 0 : index
      %c0_40 = arith.constant 0 : index
      %63 = vector.load %arg13[%c0_39, %c0_40] : memref<32x32xf32, #tpu.memory_space<vmem>>, vector<32x32xf32>
      %c0_41 = arith.constant 0 : index
      %c0_42 = arith.constant 0 : index
      %c0_43 = arith.constant 0 : index
      %64 = vector.load %arg8[%c0_41, %c0_42, %c0_43] : memref<1x32x32xf32, #tpu.memory_space<vmem>>, vector<1x32x32xf32>
      %65 = vector.shape_cast %64 : vector<1x32x32xf32> to vector<32x32xf32>
      %66 = vector.shape_cast %63 : vector<32x32xf32> to vector<1x32x32xf32>
      tpu.vector_store %arg8[%c0_41, %c0_42, %c0_43], %66 {strides = array<i32>} : memref<1x32x32xf32, #tpu.memory_space<vmem>>, vector<1x32x32xf32>,
    } else {
    }
    return
  }
  func.func @transform_0(%arg0: i32, %arg1: i32, %arg2: i32, %arg3: i32) -> (i32, i32, i32) {
    %c0_i32 = arith.constant 0 : i32
    %c0_i32_0 = arith.constant 0 : i32
    return %arg0, %arg1, %c0_i32 : i32, i32, i32
  }
  func.func @transform_1(%arg0: i32, %arg1: i32, %arg2: i32, %arg3: i32) -> (i32, i32, i32, i32) {
    %c0_i32 = arith.constant 0 : i32
    %c0_i32_0 = arith.constant 0 : i32
    return %arg2, %arg0, %arg3, %c0_i32 : i32, i32, i32, i32
  }
  func.func @transform_2(%arg0: i32, %arg1: i32, %arg2: i32, %arg3: i32) -> (i32, i32, i32, i32) {
    %c0_i32 = arith.constant 0 : i32
    %c0_i32_0 = arith.constant 0 : i32
    return %arg2, %arg0, %arg3, %c0_i32 : i32, i32, i32, i32
  }
  func.func @transform_3(%arg0: i32, %arg1: i32, %arg2: i32, %arg3: i32) -> (i32, i32, i32) {
    %c0_i32 = arith.constant 0 : i32
    %c0_i32_0 = arith.constant 0 : i32
    %c0_i32_1 = arith.constant 0 : i32
    return %arg2, %c0_i32, %c0_i32_0 : i32, i32, i32
  }
  func.func @transform_4(%arg0: i32, %arg1: i32, %arg2: i32, %arg3: i32) -> (i32, i32, i32) {
    %c0_i32 = arith.constant 0 : i32
    %c0_i32_0 = arith.constant 0 : i32
    return %arg0, %arg1, %c0_i32 : i32, i32, i32
  }
}

</mosaic_0001>

<bundles_post_ra>
// kernel: tpu_custom_call.1
= control target key start
LH: loop header
LB: loop body
LE: loop exit
PB: predicated region body
PF: predicated region fallthrough
CT: control target
= control target key end

     0   :  { %s4085_s0 = inlined_call_operand.hbm [shape: bf16[2,32,32], index: 0, kind: input, shape index: {}]   ;;  %s4086_s1 = inlined_call_operand.hbm [shape: bf16[2,2,32,32], index: 1, kind: input, shape index: {}]   ;;  %s4087_s2 = inlined_call_operand.hbm [shape: bf16[2,2,32,32], index: 2, kind: input, shape index: {}]   ;;  %s4088_s3 = inlined_call_operand.hbm [shape: bf16[2,32,32], index: 3, kind: input, shape index: {}]   ;;  %s4089_s4 = inlined_call_operand.hbm [shape: f32[2,32,32], index: 4, kind: output, shape index: {}]  }
   0x1   :  { %4111 = sst [smem:[#allocation31_spill]] %s4086_s1 }
   0x2   :  { %4112 = sst [smem:[#allocation32_spill]] %s4087_s2 }
   0x3   :  { %4113 = sst [smem:[#allocation33_spill]] %s4089_s4 }
   0x4   :  { %9 = vsyncpa [#allocation8], 0 }
   0x5   :  { %11 = vsyncpa [#allocation8 + $0x1], 0 }
   0x6   :  { %12 = vsyncpa [#allocation11], 0 }
   0x7   :  { %14 = vsyncpa [#allocation11 + $0x1], 0 }
   0x8   :  { %15 = vsyncpa [#allocation14], 0 }
   0x9   :  { %17 = vsyncpa [#allocation14 + $0x1], 0 }
   0xa   :  { %18 = vsyncpa [#allocation9], 0 }
   0xb   :  { %20 = vsyncpa [#allocation9 + $0x1], 0  ;;  %s3087_s15 = smov 0   ;;  %s3089_s16 = smov 0  }
   0xc   :  { %s3091_s17 = smov 0   ;;  %s3093_s18 = smov 0  }
   0xd   :  { %s3095_s19 = smov 0   ;;  %s3097_s20 = smov 0  }
   0xe   :  { %s3099_s21 = smov 0   ;;  %s3101_s22 = smov 0  }
   0xf   :  { %s3103_s23 = smov 0   ;;  %s3105_s24 = smov 0  }
  0x10   :  { %s3107_s25 = smov 0   ;;  %s3109_s26 = smov 0  }
  0x11   :  { %s3111_s27 = smov 0   ;;  %s3113_s28 = smov 0  }
  0x12 LB: > { %4114 = sst [smem:[#allocation20_spill]] %s3005_s19  ;;  %s3156_s29 = sadd.s32 4294967295, %s3041_s28   ;;  %s3041_s28 = sphi %s3113_s28, %s26_s28   ;;  %s3037_s27 = sphi %s3111_s27, %s4192_s27   ;;  %s3033_s26 = sphi %s3109_s26, %s4191_s26   ;;  %s3029_s25 = sphi %s3107_s25, %s4190_s25   ;;  %s3025_s24 = sphi %s3105_s24, %s4189_s24   ;;  %s3021_s23 = sphi %s3103_s23, %s4188_s23   ;;  %s3017_s22 = sphi %s3101_s22, %s4187_s22   ;;  %s3013_s21 = sphi %s3099_s21, %s4186_s21   ;;  %s3009_s20 = sphi %s3097_s20, %s4178_s20   ;;  %s3005_s19 = sphi %s3095_s19, %s4185_s19   ;;  %s3001_s18 = sphi %s3093_s18, %s4176_s18   ;;  %s2997_s17 = sphi %s3091_s17, %s4184_s17   ;;  %s2993_s16 = sphi %s3089_s16, %s4183_s16   ;;  %s2989_s15 = sphi %s3087_s15, %s4182_s15  }
  0x13   : > { %4115 = sst [smem:[#allocation21_spill]] %s3009_s20  ;;  %s44_s30 = sadd.s32 1, %s3033_s26 }
  0x14   : > { %4116 = sst [smem:[#allocation22_spill]] %s3013_s21  ;;  %p46_p0 = scmp.ge.s32.totalorder %s44_s30, 2 }
  0x15   : > { %4117 = sst [smem:[#allocation23_spill]] %s3025_s24  ;;  %s52_s5 = sadd.s32 1, %s3037_s27 }
  0x16   : > { %4118 = sst [smem:[#allocation24_spill]] %s3029_s25  ;;  %p4100_p1 = scmp.eq.s32.totalorder %s3041_s28, 0 }
  0x17   : > { %p4099_p2 = scmp.eq.s32.totalorder %s3156_s29, 0  ;;  %s4194_s30 = smov (%p46_p0, %s44_s30), 0 }
  0x18   : > { %4119 = sst [smem:[#allocation25_spill]] %s4194_s30  ;;  %s4196_s5 = smov (!%p46_p0, %s52_s5), %s3037_s27 }
  0x19   : > { %s3167_s6 = ssub.s32 %s3033_s26, %s4194_s30  ;;  %s91_s7 = sadd.s32 1, %s3009_s20 }
  0x1a   : > { %p54_p3 = scmp.ge.s32.totalorder %s4196_s5, 2  ;;  %p98_p4 = scmp.ne.s32.totalorder %s3009_s20, %s3005_s19 }
  0x1b   : > { %p104_p5 = scmp.ne.s32.totalorder %s3005_s19, %s3001_s18  ;;  %p4098_p11 = scmp.lt.s32.totalorder %s3041_s28, 4 }
  0x1c   : > { %s4198_s5 = smov (%p54_p3, %s4196_s5), 0  ;;  %p3178_p7 = por %p98_p4, %p4100_p1 }
  0x1d   : > { %4120 = sst [smem:[#allocation26_spill]] %s4198_s5  ;;  %p3184_p8 = por %p104_p5, %p4099_p2 }
  0x1e   : > { %s3190_s10 = ssub.s32 %s3037_s27, %s4198_s5  ;;  %s235_s13 = sand.u32 1, %s3041_s28  }
  0x1f   : > { %s4122_s9 = scalar_select %p3184_p8, 1, 0 }
  0x20   : > { %s86_s11 = sor.u32 %s3167_s6, %s3190_s10  ;;  %s237_s14 = sand.u32 1, %s3009_s20  }
  0x21   : > { %4123 = sst [smem:[#allocation27_spill]] %s4122_s9  ;;  %p89_p10 = scmp.eq.s32.totalorder %s86_s11, 0 }
  0x22   : > { %s3201_s18 = sshll.u32 %s237_s14, 4  ;;  %s2280_s30 = sshll.u32 %s3037_s27, 2 }
  0x23   : > { %s3197_s12 = scalar_select %p89_p10, %s3009_s20, %s91_s7  }
  0x24   : > { %s2281_s4 = sshll.u32 %s3033_s26, 3  ;;  %s239_s25 = scalar_lea.vmem [#allocation10], %s3201_s18 }
  0x25   : > { %4124 = sst [smem:[#allocation28_spill]] %s3197_s12  ;;  %s250_s5 = sshll.u32 %s239_s25, 4  ;;  %s3206_s5 = int_to_ptr.vmem [resolvable:$true] %s250_s5 }
  0x26   : > { %s247_s24 = sadd.s32 %s2281_s4, %s2280_s30  ;;  %p3212_p12 = pnand %p4098_p11, %p3178_p7 }
  0x27   : > { %s2282_s9 = sshll.u32 %s247_s24, 6  ;;  %s4126_s1 = sld [smem:[#allocation31_spill]] }
  0x28   : > { %s4127_s2 = sld [smem:[#allocation32_spill]]  ;;  %s3226_s24 = scalar_lea.sflag [#allocation11], %s235_s13 }
  0x29   : > { %p2769_p0 = pneg %p3212_p12 }
  0x2d   : > { %s3219_s14 = scalar_lea.hbm %s4126_s1, %s2282_s9  ;;  %s2772_s19 = scalar_lea.hbm %s4126_s1, 1024 }
  0x2e   : > { %s3224_s4 = scalar_lea.hbm %s4127_s2, %s2282_s9  ;;  %s2767_s25 = scalar_lea.hbm %s3219_s14, 256 }
  0x2f   : > { %p2768_p13 = scmp.ne.s32.totalorder %s3219_s14, %s2767_s25  ;;  %p2773_p5 = scmp.lt.u32.totalorder %s3219_s14, %s4126_s1 }
  0x30   : > { %p2774_p7 = scmp.lt.u32.totalorder %s2772_s19, %s2767_s25  ;;  %p2776_p6 = scmp.lt.u32.totalorder %s2767_s25, %s3219_s14 }
  0x31   : > { %p2770_p3 = pnand %p2769_p0, %p2768_p13 }
  0x32   : > { %p2775_p10 = por %p2774_p7, %p2773_p5 }
  0x33   : > { %p2771_p4 = pneg %p2770_p3 }
  0x34   : > { %p2777_p11 = por %p2776_p6, %p2775_p10 }
  0x36   : > { %p2778_p2 = pnand %p2777_p11, %p2771_p4 }
  0x38   : > { %2781 = shalt.err (!%p2778_p2)
}
  0x39   : > { %s2782_s9 = scalar_lea.vmem %s3206_s5, 256  ;;  %s3043_s13 = smov [#allocation10]  }
  0x3a   : > { %p2783_p13 = scmp.ne.s32.totalorder %s3206_s5, %s2782_s9  ;;  %s2787_s7 = sshll.u32 %s3043_s13, 4  ;;  %s2788_s7 = int_to_ptr.vmem [resolvable:$false] %s2787_s7 }
  0x3b   : > { %s2789_s30 = scalar_lea.vmem %s2788_s7, 512  ;;  %p2790_p9 = scmp.lt.s32.totalorder %s3206_s5, %s2788_s7 }
  0x3c   : > { %p2785_p3 = pnand %p2783_p13, %p2769_p0  ;;  %p2791_p5 = scmp.lt.s32.totalorder %s2789_s30, %s2782_s9 }
  0x3e   : > { %p2786_p1 = pneg %p2785_p3  ;;  %p2792_p7 = por %p2791_p5, %p2790_p9 }
  0x40   : > { %p2793_p6 = pnand %p2792_p7, %p2786_p1 }
  0x42   : > { %2796 = shalt.err (!%p2793_p6)
}
  0x43   : > { %s4101_s25 = smov 64   ;;  %s4103_s8 = smov 4  }
  0x44   : > { %2528 = dma.hbm_to_vmem [thread:$0]  (!%p3212_p12), %s3219_s14, 256, %s3206_s5, %s3226_s24, %s4101_s25, %s4101_s25, %s4103_s8  }
  0x45   : > { %s264_s19 = scalar_lea.vmem [#allocation12], %s3201_s18  ;;  %p2290_p1 = scmp.ge.s32.totalorder %s3041_s28, 1 }
  0x46   : > { %s275_s20 = sshll.u32 %s264_s19, 4  ;;  %p304_p2 = scmp.lt.s32.totalorder %s3041_s28, 5  ;;  %s3259_s20 = int_to_ptr.vmem [resolvable:$true] %s275_s20 }
  0x47   : > { %s2273_s9 = sadd.s32 4294967294, %s3041_s28   ;;  %s61_s13 = sadd.s32 1, %s3021_s23 }
  0x48   : > { %p3262_p9 = pnand %p2290_p1, %p304_p2  ;;  %p68_p11 = scmp.ne.s32.totalorder %s3021_s23, %s3017_s22 }
  0x49   : > { %p4129_p4 = scmp.eq.s32.totalorder %s3190_s10, 0  ;;  %p4131_p10 = scmp.eq.s32.totalorder %s3041_s28, 0 }
  0x4a   : > { %s4128_s12 = scalar_select %p3262_p9, 1, 0 }
  0x4b   : > { %s3273_s7 = scalar_select %p4129_p4, %s3021_s23, %s61_s13  }
  0x4c   : > { %p3277_p13 = por %p4131_p10, %p68_p11  ;;  %p74_p3 = scmp.ne.s32.totalorder %s3017_s22, %s3013_s21 }
  0x4d   : > { %4130 = sst [smem:[#allocation29_spill]] %s3273_s7  ;;  %p186_p5 = scmp.eq.s32.totalorder %s3156_s29, 3 }
  0x4e   : > { %p192_p7 = scmp.eq.s32.totalorder %s2273_s9, 3  ;;  %p4133_p6 = scmp.eq.s32.totalorder %s3156_s29, 0 }
  0x4f   : > { %s4107_s10 = sand.u32 1, %s3021_s23   ;;  %p3291_p2 = por %p186_p5, %p68_p11 }
  0x50   : > { %p3286_p1 = por %p4133_p6, %p74_p3  ;;  %p3295_p4 = por %p192_p7, %p74_p3 }
  0x51   : > { %s4135_s14 = scalar_select %p3291_p2, 1, 0 }
  0x52   : > { %s4134_s18 = scalar_select %p3286_p1, 1, 0 }
  0x53   : > { %s4136_s30 = scalar_select %p3295_p4, 1, 0 }
  0x54   : > { %s2276_s19 = sshll.u32 %s4107_s10, 4  ;;  %s2351_s13 = sshll.u32 %s3037_s27, 8 }
  0x55   : > { %4137 = sst [smem:[#allocation30_spill]] %s4136_s30  ;;  %s3305_s8 = scalar_lea.hbm %s4085_s0, %s2351_s13 }
  0x56   : > { %s216_s1 = scalar_lea.vmem [#allocation7], %s2276_s19  ;;  %p4138_p11 = scmp.lt.s32.totalorder %s3041_s28, 4 }
  0x57   : > { %s225_s7 = sshll.u32 %s216_s1, 4  ;;  %s2797_s30 = scalar_lea.hbm %s3224_s4, 256  ;;  %s3307_s7 = int_to_ptr.vmem [resolvable:$true] %s225_s7 }
  0x58   : > { %p3313_p10 = pnand %p4138_p11, %p3277_p13  ;;  %p2798_p3 = scmp.ne.s32.totalorder %s3224_s4, %s2797_s30 }
  0x59   : > { %s2802_s13 = scalar_lea.hbm %s4127_s2, 1024  ;;  %p2803_p6 = scmp.lt.u32.totalorder %s3224_s4, %s4127_s2 }
  0x5a   : > { %p2800_p5 = pnand %p2798_p3, %p2769_p0  ;;  %p2804_p4 = scmp.lt.u32.totalorder %s2802_s13, %s2797_s30 }
  0x5b   : > { %p2806_p13 = scmp.lt.u32.totalorder %s2797_s30, %s3224_s4 }
  0x5c   : > { %p2801_p7 = pneg %p2800_p5  ;;  %p2805_p2 = por %p2804_p4, %p2803_p6 }
  0x5e   : > { %p2807_p11 = por %p2806_p13, %p2805_p2 }
  0x60   : > { %p2808_p8 = pnand %p2807_p11, %p2801_p7 }
  0x62   : > { %2811 = shalt.err (!%p2808_p8)
}
  0x63   : > { %s2812_s5 = scalar_lea.vmem %s3259_s20, 256  ;;  %s3046_s10 = smov [#allocation12]  }
  0x64   : > { %p2813_p3 = scmp.ne.s32.totalorder %s3259_s20, %s2812_s5  ;;  %s2817_s9 = sshll.u32 %s3046_s10, 4  ;;  %s2818_s9 = int_to_ptr.vmem [resolvable:$false] %s2817_s9 }
  0x65   : > { %s2819_s25 = scalar_lea.vmem %s2818_s9, 512  ;;  %p2820_p9 = scmp.lt.s32.totalorder %s3259_s20, %s2818_s9 }
  0x66   : > { %p2815_p5 = pnand %p2813_p3, %p2769_p0  ;;  %p2821_p4 = scmp.lt.s32.totalorder %s2819_s25, %s2812_s5 }
  0x68   : > { %p2816_p1 = pneg %p2815_p5  ;;  %p2822_p6 = por %p2821_p4, %p2820_p9 }
  0x6a   : > { %p2823_p2 = pnand %p2822_p6, %p2816_p1 }
  0x6c   : > { %2826 = shalt.err (!%p2823_p2)
}
  0x6d   : > { %s4140_s30 = smov 4   ;;  %s4141_s13 = smov 64  }
  0x6e   : > { %2531 = dma.hbm_to_vmem [thread:$0]  (!%p3212_p12), %s3224_s4, 256, %s3259_s20, %s3226_s24, %s4141_s13, %s4141_s13, %s4140_s30  }
  0x6f   : > { %s4142_s19 = sand.u32 1, %s3021_s23   ;;  %s2827_s5 = scalar_lea.hbm %s3305_s8, 256 }
  0x70   : > { %s3346_s1 = scalar_lea.sflag [#allocation8], %s4142_s19  ;;  %p2828_p8 = scmp.ne.s32.totalorder %s3305_s8, %s2827_s5 }
  0x71   : > { %p2829_p0 = pneg %p3313_p10  ;;  %s2832_s9 = scalar_lea.hbm %s4085_s0, 512 }
  0x72   : > { %p2833_p7 = scmp.lt.u32.totalorder %s3305_s8, %s4085_s0  ;;  %p2834_p12 = scmp.lt.u32.totalorder %s2832_s9, %s2827_s5 }
  0x73   : > { %p2830_p9 = pnand %p2829_p0, %p2828_p8  ;;  %p2836_p11 = scmp.lt.u32.totalorder %s2827_s5, %s3305_s8 }
  0x74   : > { %p2835_p13 = por %p2834_p12, %p2833_p7 }
  0x75   : > { %p2831_p1 = pneg %p2830_p9 }
  0x76   : > { %p2837_p3 = por %p2836_p11, %p2835_p13 }
  0x78   : > { %p2838_p5 = pnand %p2837_p3, %p2831_p1 }
  0x7a   : > { %2841 = shalt.err (!%p2838_p5)
}
  0x7b   : > { %s2842_s4 = scalar_lea.vmem %s3307_s7, 256  ;;  %s3047_s24 = smov [#allocation7]  }
  0x7c   : > { %p2843_p4 = scmp.ne.s32.totalorder %s3307_s7, %s2842_s4  ;;  %s2847_s20 = sshll.u32 %s3047_s24, 4  ;;  %s2848_s20 = int_to_ptr.vmem [resolvable:$false] %s2847_s20 }
  0x7d   : > { %s2849_s2 = scalar_lea.vmem %s2848_s20, 512  ;;  %p2850_p8 = scmp.lt.s32.totalorder %s3307_s7, %s2848_s20 }
  0x7e   : > { %p2845_p6 = pnand %p2843_p4, %p2829_p0  ;;  %p2851_p9 = scmp.lt.s32.totalorder %s2849_s2, %s2842_s4 }
  0x80   : > { %p2846_p2 = pneg %p2845_p6  ;;  %p2852_p7 = por %p2851_p9, %p2850_p8 }
  0x82   : > { %p2853_p12 = pnand %p2852_p7, %p2846_p2 }
  0x84   : > { %2856 = shalt.err (!%p2853_p12)
}
  0x85   : > { %2525 = dma.hbm_to_vmem [thread:$0]  (!%p3313_p10), %s3305_s8, 256, %s3307_s7, %s3346_s1, %s4141_s13, %s4141_s13, %s4140_s30  }
  0x86   : > { %s147_s21 = sadd.s32 1, %s2997_s17  ;;  %p4143_p0 = scmp.eq.s32.totalorder %s3167_s6, 0 }
  0x87   : > { %p154_p1 = scmp.ne.s32.totalorder %s2997_s17, %s2993_s16  ;;  %p160_p13 = scmp.ne.s32.totalorder %s2993_s16, %s2989_s15 }
  0x88   : > { %s3381_s19 = scalar_select %p4143_p0, %s2997_s17, %s147_s21  }
  0x89   : > { %s285_s5 = sand.u32 1, %s2997_s17   ;;  %s2352_s11 = sshll.u32 %s3033_s26, 8 }
  0x8a   : > { %p4144_p11 = scmp.eq.s32.totalorder %s3041_s28, 0  ;;  %p4145_p5 = scmp.eq.s32.totalorder %s3156_s29, 0 }
  0x8b   : > { %s2287_s9 = sshll.u32 %s285_s5, 4  ;;  %s3400_s8 = scalar_lea.hbm %s4088_s3, %s2352_s11 }
  0x8c   : > { %p156_p3 = por %p154_p1, %p4144_p11  ;;  %p3393_p4 = por %p160_p13, %p4145_p5 }
  0x8d   : > { %s289_s15 = scalar_lea.vmem [#allocation13], %s2287_s9  ;;  %p4147_p10 = scmp.lt.s32.totalorder %s3041_s28, 4 }
  0x8e   : > { %s296_s6 = sshll.u32 %s289_s15, 4  ;;  %s3410_s1 = scalar_lea.sflag [#allocation14], %s285_s5  ;;  %s3408_s6 = int_to_ptr.vmem [resolvable:$true] %s296_s6 }
  0x8f   : > { %p3404_p6 = pnand %p4147_p10, %p156_p3  ;;  %s2857_s24 = scalar_lea.hbm %s3400_s8, 256 }
  0x90   : > { %p2858_p2 = scmp.ne.s32.totalorder %s3400_s8, %s2857_s24  ;;  %s2862_s21 = scalar_lea.hbm %s4088_s3, 512 }
  0x91   : > { %p2859_p8 = pneg %p3404_p6  ;;  %p2863_p12 = scmp.lt.u32.totalorder %s3400_s8, %s4088_s3 }
  0x92   : > { %p2864_p0 = scmp.lt.u32.totalorder %s2862_s21, %s2857_s24  ;;  %p2866_p13 = scmp.lt.u32.totalorder %s2857_s24, %s3400_s8 }
  0x93   : > { %p2860_p9 = pnand %p2859_p8, %p2858_p2 }
  0x94   : > { %p2865_p1 = por %p2864_p0, %p2863_p12 }
  0x95   : > { %p2861_p7 = pneg %p2860_p9 }
  0x96   : > { %p2867_p11 = por %p2866_p13, %p2865_p1 }
  0x98   : > { %p2868_p3 = pnand %p2867_p11, %p2861_p7 }
  0x9a   : > { %2871 = shalt.err (!%p2868_p3)
}
  0x9b   : > { %s2872_s5 = scalar_lea.vmem %s3408_s6, 256  ;;  %s3048_s25 = smov [#allocation13]  }
  0x9c   : > { %p2873_p5 = scmp.ne.s32.totalorder %s3408_s6, %s2872_s5  ;;  %s2877_s4 = sshll.u32 %s3048_s25, 4  ;;  %s2878_s4 = int_to_ptr.vmem [resolvable:$false] %s2877_s4 }
  0x9d   : > { %s2879_s15 = scalar_lea.vmem %s2878_s4, 512  ;;  %p2880_p9 = scmp.lt.s32.totalorder %s3408_s6, %s2878_s4 }
  0x9e   : > { %p2875_p10 = pnand %p2873_p5, %p2859_p8  ;;  %p2881_p12 = scmp.lt.s32.totalorder %s2879_s15, %s2872_s5 }
  0xa0   : > { %p2876_p2 = pneg %p2875_p10  ;;  %p2882_p0 = por %p2881_p12, %p2880_p9 }
  0xa2   : > { %p2883_p1 = pnand %p2882_p0, %p2876_p2 }
  0xa4   : > { %2886 = shalt.err (!%p2883_p1)
}
  0xa5   : > { %2534 = dma.hbm_to_vmem [thread:$0]  (!%p3404_p6), %s3400_s8, 256, %s3408_s6, %s3410_s1, %s4141_s13, %s4141_s13, %s4140_s30  }
  0xa6   : > { %p4149_p8 = scmp.ne.s32.totalorder %s4128_s12, 0 }
  0xa7   : > { %s3444_s24 = sand.u32 (!%p4149_p8), 1, %s3017_s22   ;;  %p4150_p7 = scmp.ne.s32.totalorder (!%p4149_p8), %s4134_s18, 0 }
  0xa8   : > { %308 = sbr.rel (%p4149_p8) target bundleno = 1586 (0x632), region = 36  ;;  %s2291_s20 = sshll.u32 (!%p4149_p8), %s3444_s24, 4 }
  0xa9   : > { %s311_s2 = scalar_lea.sflag (!%p4149_p8), [#allocation8], %s3444_s24  ;;  %s314_s21 = scalar_lea.vmem (!%p4149_p8), [#allocation7], %s2291_s20 }
  0xaf   : > { %2972 = dma.done.wait (%p4150_p7), %s311_s2, 256  }
  0xb0   : > { %2974 = vsyncadd (%p4150_p7), %s311_s2, 4294967040  ;;  %s4151_s7 = sld [smem:[#allocation20_spill]]  ;;  %s4152_s30 = sld [smem:[#allocation27_spill]] }
  0xb1   : > { %s319_s13 = sand.u32 1, %s3156_s29  }
  0xb2   : > { %s320_s6 = scalar_lea.sflag [#allocation11], %s319_s13 }
  0xb6   : > { %s321_s12 = sand.u32 1, %s4151_s7   ;;  %p4153_p6 = scmp.ne.s32.totalorder %s4152_s30, 0 }
  0xb7   : > { %s2292_s8 = sshll.u32 %s321_s12, 4 }
  0xb8   : > { %s3454_s1 = scalar_lea.vmem [#allocation10], %s2292_s8 }
  0xb9   : > { %2976 = dma.done.wait (%p4153_p6), %s320_s6, 512  }
  0xba   : > { %2978 = vsyncadd (%p4153_p6), %s320_s6, 4294966784  ;;  %s337_s11 = sand.u32 1, %s2993_s16   ;;  %s3461_s18 = scalar_lea.vmem [#allocation12], %s2292_s8 }
  0xbb   : > { %s2294_s9 = sshll.u32 %s337_s11, 4  ;;  %s338_s5 = scalar_lea.sflag [#allocation14], %s337_s11 }
  0xbc   : > { %s3463_s25 = scalar_lea.vmem [#allocation13], %s2294_s9 }
  0xbd   : > { %2980 = dma.done.wait (%p3393_p4), %s338_s5, 256  }
  0xbe   : > { %2982 = vsyncadd (%p3393_p4), %s338_s5, 4294967040  ;;  %s4154_s29 = sld [smem:[#allocation23_spill]]  ;;  %s2295_s4 = sshll.u32 %s3444_s24, 5 }
  0xbf   : > { %s3471_s15 = scalar_lea.vmem [#allocation15], %s2295_s4 }
  0xc4   : > { %p387_p13 = scmp.eq.s32.totalorder %s4154_s29, 0 }
  0xc5   : > { %v400_v0 = vld [vmem:[%s314_s21 + $0x8] sm:$0xf] (%p387_p13)  ;;  %v398_v1 = vld [vmem:[%s314_s21] sm:$0xf] (%p387_p13)  ;;  %v401_v4 = vld [vmem:[%s314_s21 + $0xc] sm:$0xf] (%p387_p13) }
  0xc6   : > { %392 = sbr.rel (!%p387_p13) target bundleno = 338 (0x152), region = 56  ;;  %v404_v2 = vmul.bf16 (%p387_p13), 1052065461, %v400_v0  ;;  %v402_v3 = vmul.bf16 (%p387_p13), 1052065461, %v398_v1  ;;  %s3049_s20 = smov (%p387_p13), 120  }
  0xc7   : > { %v405_v5 = vmul.bf16 (%p387_p13), 1052065461, %v401_v4  ;;  %v399_v6 = vld [vmem:[%s314_s21 + $0x4] sm:$0xf] (%p387_p13)  ;;  %vm466_vm0 = vcmask (%p387_p13), 64512   ;;  %s3050_s10 = smov (%p387_p13), 112  }
  0xc8   : > { %414 = vrot.lane.b32.xlu1 (%p387_p13), %v404_v2, %s3049_s20  ;;  %410 = vrot.lane.b32.xlu0 (%p387_p13), %v402_v3, %s3049_s20  ;;  %v403_v7 = vmul.bf16 (%p387_p13), 1052065461, %v399_v6  ;;  %vm393_vm1 = vcmask (%p387_p13), 261120   ;;  %v3051_v10 = vmov (%p387_p13), 0.0   ;;  %s3052_s2 = smov (%p387_p13), 104  }
  0xc9   : > { %v2298_v8 = vcombine.low (%p387_p13), %v404_v2, %v405_v5  ;;  %394 = vst.msk [vmem:[#allocation6] sm:$0xff] (%p387_p13), %vm393_vm1, %v3051_v10  ;;  %395 = vst.msk [vmem:[#allocation6 + $0x8] sm:$0xff] (%p387_p13), %vm393_vm1, %v3051_v10 }
  0xca   : > { %v2297_v9 = vcombine.low (%p387_p13), %v402_v3, %v403_v7  ;;  %396 = vst.msk [vmem:[#allocation6 + $0x10] sm:$0xff] (%p387_p13), %vm393_vm1, %v3051_v10  ;;  %397 = vst.msk [vmem:[#allocation6 + $0x18] sm:$0xff] (%p387_p13), %vm393_vm1, %v3051_v10 }
  0xcb   : > { %468 = vst.msk [vmem:[#allocation2 + $0x8] sm:$0xff] (%p387_p13), %vm466_vm0, %v2298_v8 }
  0xcc   : > { %416 = vrot.lane.b32.xlu1 (%p387_p13), %v405_v5, %s3049_s20  ;;  %412 = vrot.lane.b32.xlu0 (%p387_p13), %v403_v7, %s3049_s20  ;;  %467 = vst.msk [vmem:[#allocation2] sm:$0xff] (%p387_p13), %vm466_vm0, %v2297_v9 }
  0xd0   : > { %420 = vrot.lane.b32.xlu1 %v403_v7, %s3050_s10  ;;  %418 = vrot.lane.b32.xlu0 %v402_v3, %s3050_s10 }
  0xd4   : > { %424 = vrot.lane.b32.xlu1 %v405_v5, %s3050_s10  ;;  %422 = vrot.lane.b32.xlu0 %v404_v2, %s3050_s10 }
  0xd8   : > { %428 = vrot.lane.b32.xlu1 %v403_v7, %s3052_s2  ;;  %426 = vrot.lane.b32.xlu0 %v402_v3, %s3052_s2 }
  0xdc   : > { %432 = vrot.lane.b32.xlu1 %v405_v5, %s3052_s2  ;;  %430 = vrot.lane.b32.xlu0 %v404_v2, %s3052_s2 }
 0x13a   : > { %v415_v11 = vpop.permute.xlu1 %414  ;;  %v411_v12 = vpop.permute.xlu0 %410 }
 0x13e   : > { %v417_v13 = vpop.permute.xlu1 %416  ;;  %v413_v14 = vpop.permute.xlu0 %412 }
 0x13f   : > { %v2300_v15 = vcombine.low %v415_v11, %v417_v13  ;;  %v2299_v16 = vcombine.low %v411_v12, %v413_v14 }
 0x141   : > { %470 = vst.msk [vmem:[#allocation2 + $0x18] sm:$0xff] %vm466_vm0, %v2300_v15  ;;  %469 = vst.msk [vmem:[#allocation2 + $0x10] sm:$0xff] %vm466_vm0, %v2299_v16 }
 0x142   : > { %v421_v17 = vpop.permute.xlu1 %420  ;;  %v419_v18 = vpop.permute.xlu0 %418 }
 0x143   : > { %v2301_v19 = vcombine.low %v419_v18, %v421_v17 }
 0x145   : > { %471 = vst.msk [vmem:[#allocation2 + $0x20] sm:$0xff] %vm466_vm0, %v2301_v19 }
 0x146   : > { %v425_v20 = vpop.permute.xlu1 %424  ;;  %v423_v21 = vpop.permute.xlu0 %422 }
 0x147   : > { %v2302_v22 = vcombine.low %v423_v21, %v425_v20 }
 0x149   : > { %472 = vst.msk [vmem:[#allocation2 + $0x28] sm:$0xff] %vm466_vm0, %v2302_v22 }
 0x14a   : > { %v429_v23 = vpop.permute.xlu1 %428  ;;  %v427_v24 = vpop.permute.xlu0 %426 }
 0x14b   : > { %v2303_v25 = vcombine.low %v427_v24, %v429_v23 }
 0x14d   : > { %473 = vst.msk [vmem:[#allocation2 + $0x30] sm:$0xff] %vm466_vm0, %v2303_v25 }
 0x14e   : > { %v433_v26 = vpop.permute.xlu1 %432  ;;  %v431_v27 = vpop.permute.xlu0 %430 }
 0x14f   : > { %v2304_v28 = vcombine.low %v431_v27, %v433_v26 }
 0x151   : > { %474 = vst.msk [vmem:[#allocation2 + $0x38] sm:$0xff] %vm466_vm0, %v2304_v28 }
 0x152 PF: > { %v528_v29 = vld [vmem:[%s3454_s1] sm:$0xf]  ;;  %v530_v30 = vld [vmem:[%s3454_s1 + $0x8] sm:$0xf]  ;;  %s3053_s21 = smov 120   ;;  %vm511_vm2 = vcmask 64512  }
 0x153   : > { %536 = vrot.lane.b32.xlu0 %v528_v29, %s3053_s21  ;;  %540 = vrot.lane.b32.xlu1 %v530_v30, %s3053_s21  ;;  %v529_v31 = vld [vmem:[%s3454_s1 + $0x4] sm:$0xf]  ;;  %v531_v32 = vld [vmem:[%s3454_s1 + $0xc] sm:$0xf]  ;;  %s3054_s7 = smov 112   ;;  %s3055_s30 = smov 104  }
 0x154   : > { %v2305_v33 = vcombine.low %v528_v29, %v529_v31  ;;  %v2306_v35 = vcombine.low %v530_v30, %v531_v32  ;;  %v596_v38 = vld [vmem:[#allocation2 + $0x20] sm:$0xff]  ;;  %v594_v40 = vld [vmem:[#allocation2 + $0x10] sm:$0xff]  ;;  %v595_v60 = vld [vmem:[#allocation2 + $0x18] sm:$0xff]  ;;  %vm885_vm3 = vcmask 261120   ;;  %vm478_vm4 = vcmask 7168   ;;  %s4168_s13 = sld [smem:[#allocation23_spill]] }
 0x155   : > { %2420 = vmatprep.mubr.msk.bf16.mxu0 %vm511_vm2, %v596_v38  ;;  %v598_v1 = vld [vmem:[#allocation2 + $0x30] sm:$0xff]  ;;  %v597_v2 = vld [vmem:[#allocation2 + $0x28] sm:$0xff]  ;;  %v3056_v10 = vmov -inf   ;;  %v3057_v25 = vmov 0.0   ;;  %vm1824_vm5 = vcmask 1043456  }
 0x156   : > { %2500 = vmatprep.subr.msk.bf16.mxu1 %vm511_vm2, %v2305_v33  ;;  %v614_v36 = vsel %vm511_vm2, %v2305_v33, 0  ;;  %v617_v37 = vsel %vm511_vm2, %v2306_v35, 0  ;;  %479 = vst.msk [vmem:[#allocation3] sm:$0xff] %vm478_vm4, %v3056_v10  ;;  %480 = vst.msk [vmem:[#allocation3 + $0x8] sm:$0xff] %vm478_vm4, %v3056_v10 }
 0x157   : > { %538 = vrot.lane.b32.xlu0 %v529_v31, %s3053_s21  ;;  %542 = vrot.lane.b32.xlu1 %v531_v32, %s3053_s21  ;;  %v593_v39 = vld [vmem:[#allocation2 + $0x8] sm:$0xff]  ;;  %481 = vst.msk [vmem:[#allocation3 + $0x10] sm:$0xff] %vm478_vm4, %v3056_v10  ;;  %482 = vst.msk [vmem:[#allocation3 + $0x18] sm:$0xff] %vm478_vm4, %v3056_v10 }
 0x158   : > { %v592_v34 = vld [vmem:[#allocation2] sm:$0xff]  ;;  %2401 = vmatpush3.bf16.xpose.msra.mxu1 %v614_v36  ;;  %v599_v4 = vld [vmem:[#allocation2 + $0x38] sm:$0xff]  ;;  %483 = vst.msk [vmem:[#allocation3 + $0x20] sm:$0xff] %vm478_vm4, %v3056_v10  ;;  %484 = vst.msk [vmem:[#allocation3 + $0x28] sm:$0xff] %vm478_vm4, %v3056_v10 }
 0x159   : > { %2404 = vmatprep.mubr.msk.bf16.mxu1 %vm511_vm2, %v592_v34  ;;  %2501 = vmatprep.subr.msk.bf16.mxu1 %vm511_vm2, %v2306_v35  ;;  %485 = vst.msk [vmem:[#allocation3 + $0x30] sm:$0xff] %vm478_vm4, %v3056_v10  ;;  %486 = vst.msk [vmem:[#allocation3 + $0x38] sm:$0xff] %vm478_vm4, %v3056_v10  ;;  %v3058_v35 = vmov 0  }
 0x15a   : > { %487 = vst.msk [vmem:[#allocation3 + $0x40] sm:$0xff] %vm478_vm4, %v3056_v10  ;;  %488 = vst.msk [vmem:[#allocation3 + $0x48] sm:$0xff] %vm478_vm4, %v3056_v10  ;;  %2668 = vset.pattern.permute.xlu0 %v3058_v35  ;;  %2667 = vset.pattern.permute.xlu1 %v3058_v35  ;;  %p2071_p4 = scmp.eq.s32.totalorder %s4168_s13, 1 }
 0x15b   : > { %546 = vrot.lane.b32.xlu1 %v529_v31, %s3054_s7  ;;  %544 = vrot.lane.b32.xlu0 %v528_v29, %s3054_s7  ;;  %489 = vst.msk [vmem:[#allocation3 + $0x50] sm:$0xff] %vm478_vm4, %v3056_v10  ;;  %490 = vst.msk [vmem:[#allocation3 + $0x58] sm:$0xff] %vm478_vm4, %v3056_v10 }
 0x15c   : > { %491 = vst.msk [vmem:[#allocation3 + $0x60] sm:$0xff] %vm478_vm4, %v3056_v10  ;;  %492 = vst.msk [vmem:[#allocation3 + $0x68] sm:$0xff] %vm478_vm4, %v3056_v10 }
 0x15d   : > { %493 = vst.msk [vmem:[#allocation3 + $0x70] sm:$0xff] %vm478_vm4, %v3056_v10  ;;  %494 = vst.msk [vmem:[#allocation3 + $0x78] sm:$0xff] %vm478_vm4, %v3056_v10  ;;  %v3629_v38 = vld [vmem:[#allocation3] sm:$0xff] }
 0x15e   : > { %500 = vst.msk [vmem:[#allocation4 + $0x28] sm:$0xff] %vm478_vm4, %v3057_v25  ;;  %495 = vst.msk [vmem:[#allocation4] sm:$0xff] %vm478_vm4, %v3057_v25 }
 0x15f   : > { %550 = vrot.lane.b32.xlu1 %v531_v32, %s3054_s7  ;;  %548 = vrot.lane.b32.xlu0 %v530_v30, %s3054_s7  ;;  %496 = vst.msk [vmem:[#allocation4 + $0x8] sm:$0xff] %vm478_vm4, %v3057_v25  ;;  %497 = vst.msk [vmem:[#allocation4 + $0x10] sm:$0xff] %vm478_vm4, %v3057_v25 }
 0x160   : > { %2403 = vmatpush3.bf16.xpose.msra.mxu1 %v617_v37  ;;  %498 = vst.msk [vmem:[#allocation4 + $0x18] sm:$0xff] %vm478_vm4, %v3057_v25  ;;  %499 = vst.msk [vmem:[#allocation4 + $0x20] sm:$0xff] %vm478_vm4, %v3057_v25 }
 0x161   : > { %501 = vst.msk [vmem:[#allocation4 + $0x30] sm:$0xff] %vm478_vm4, %v3057_v25  ;;  %502 = vst.msk [vmem:[#allocation4 + $0x38] sm:$0xff] %vm478_vm4, %v3057_v25 }
 0x162   : > { %503 = vst.msk [vmem:[#allocation4 + $0x40] sm:$0xff] %vm478_vm4, %v3057_v25  ;;  %504 = vst.msk [vmem:[#allocation4 + $0x48] sm:$0xff] %vm478_vm4, %v3057_v25  ;;  %v3703_v10 = vld [vmem:[#allocation3 + $0x50] sm:$0xff] }
 0x163   : > { %554 = vrot.lane.b32.xlu1 %v529_v31, %s3055_s30  ;;  %552 = vrot.lane.b32.xlu0 %v528_v29, %s3055_s30  ;;  %505 = vst.msk [vmem:[#allocation4 + $0x50] sm:$0xff] %vm478_vm4, %v3057_v25  ;;  %506 = vst.msk [vmem:[#allocation4 + $0x58] sm:$0xff] %vm478_vm4, %v3057_v25 }
 0x164   : > { %507 = vst.msk [vmem:[#allocation4 + $0x60] sm:$0xff] %vm478_vm4, %v3057_v25  ;;  %508 = vst.msk [vmem:[#allocation4 + $0x68] sm:$0xff] %vm478_vm4, %v3057_v25 }
 0x165   : > { %509 = vst.msk [vmem:[#allocation4 + $0x70] sm:$0xff] %vm478_vm4, %v3057_v25  ;;  %510 = vst.msk [vmem:[#allocation4 + $0x78] sm:$0xff] %vm478_vm4, %v3057_v25 }
 0x166   : > { %512 = vst.msk [vmem:[#allocation5] sm:$0xff] %vm511_vm2, %v3057_v25  ;;  %513 = vst.msk [vmem:[#allocation5 + $0x8] sm:$0xff] %vm511_vm2, %v3057_v25 }
 0x167   : > { %558 = vrot.lane.b32.xlu1 %v531_v32, %s3055_s30  ;;  %556 = vrot.lane.b32.xlu0 %v530_v30, %s3055_s30  ;;  %514 = vst.msk [vmem:[#allocation5 + $0x10] sm:$0xff] %vm511_vm2, %v3057_v25  ;;  %515 = vst.msk [vmem:[#allocation5 + $0x18] sm:$0xff] %vm511_vm2, %v3057_v25 }
 0x168   : > { %2405 = vmatmul.mubr.msk.bf16.vlgmr.msra.gmra.mrb[0].mxu1 %vm511_vm2, %v593_v39  ;;  %516 = vst.msk [vmem:[#allocation5 + $0x20] sm:$0xff] %vm511_vm2, %v3057_v25  ;;  %517 = vst.msk [vmem:[#allocation5 + $0x28] sm:$0xff] %vm511_vm2, %v3057_v25 }
 0x169   : > { %2412 = vmatprep.mubr.msk.bf16.mxu1 %vm511_vm2, %v594_v40  ;;  %518 = vst.msk [vmem:[#allocation5 + $0x30] sm:$0xff] %vm511_vm2, %v3057_v25  ;;  %519 = vst.msk [vmem:[#allocation5 + $0x38] sm:$0xff] %vm511_vm2, %v3057_v25 }
 0x16a   : > { %520 = vst.msk [vmem:[#allocation5 + $0x40] sm:$0xff] %vm511_vm2, %v3057_v25  ;;  %521 = vst.msk [vmem:[#allocation5 + $0x48] sm:$0xff] %vm511_vm2, %v3057_v25 }
 0x16b   : > { %522 = vst.msk [vmem:[#allocation5 + $0x50] sm:$0xff] %vm511_vm2, %v3057_v25  ;;  %523 = vst.msk [vmem:[#allocation5 + $0x58] sm:$0xff] %vm511_vm2, %v3057_v25 }
 0x16c   : > { %524 = vst.msk [vmem:[#allocation5 + $0x60] sm:$0xff] %vm511_vm2, %v3057_v25  ;;  %525 = vst.msk [vmem:[#allocation5 + $0x68] sm:$0xff] %vm511_vm2, %v3057_v25 }
 0x16d   : > { %526 = vst.msk [vmem:[#allocation5 + $0x70] sm:$0xff] %vm511_vm2, %v3057_v25  ;;  %527 = vst.msk [vmem:[#allocation5 + $0x78] sm:$0xff] %vm511_vm2, %v3057_v25 }
 0x1c5   : > { %v537_v41 = vpop.permute.xlu0 %536  ;;  %v541_v42 = vpop.permute.xlu1 %540 }
 0x1c9   : > { %v539_v43 = vpop.permute.xlu0 %538  ;;  %v543_v44 = vpop.permute.xlu1 %542 }
 0x1ca   : > { %v2309_v45 = vcombine.low %v537_v41, %v539_v43  ;;  %v2310_v46 = vcombine.low %v541_v42, %v543_v44  ;;  %v3640_v43 = vld [vmem:[#allocation3 + $0x30] sm:$0xff] }
 0x1cc   : > { %v681_v47 = vsel %vm511_vm2, %v2309_v45, 0  ;;  %2502 = vmatprep.subr.msk.bf16.mxu1 %vm511_vm2, %v2309_v45  ;;  %v684_v55 = vsel %vm511_vm2, %v2310_v46, 0 }
 0x1cd   : > { %2409 = vmatpush3.bf16.xpose.msra.mxu1 %v681_v47  ;;  %v547_v48 = vpop.permute.xlu1 %546  ;;  %v545_v49 = vpop.permute.xlu0 %544  ;;  %v3647_v47 = vld [vmem:[#allocation3 + $0x20] sm:$0xff] }
 0x1ce   : > { %2503 = vmatprep.subr.msk.bf16.mxu1 %vm511_vm2, %v2310_v46  ;;  %v2313_v50 = vcombine.low %v545_v49, %v547_v48  ;;  %v3645_v46 = vld [vmem:[#allocation3 + $0x28] sm:$0xff] }
 0x1d0   : > { %2504 = vmatprep.subr.msk.bf16.mxu0 %vm511_vm2, %v2313_v50  ;;  %v748_v51 = vsel %vm511_vm2, %v2313_v50, 0 }
 0x1d1   : > { %2417 = vmatpush3.bf16.xpose.msra.mxu0 %v748_v51  ;;  %v551_v52 = vpop.permute.xlu1 %550  ;;  %v549_v53 = vpop.permute.xlu0 %548 }
 0x1d2   : > { %v2314_v54 = vcombine.low %v549_v53, %v551_v52  ;;  %v3659_v53 = vld [vmem:[#allocation3 + $0x10] sm:$0xff] }
 0x1d4   : > { %2505 = vmatprep.subr.msk.bf16.mxu0 %vm511_vm2, %v2314_v54  ;;  %v751_v59 = vsel %vm511_vm2, %v2314_v54, 0 }
 0x1d5   : > { %2411 = vmatpush3.bf16.xpose.msra.mxu1 %v684_v55  ;;  %v555_v56 = vpop.permute.xlu1 %554  ;;  %v553_v57 = vpop.permute.xlu0 %552  ;;  %v3666_v55 = vld [vmem:[#allocation3 + $0x38] sm:$0xff] }
 0x1d6   : > { %v2317_v58 = vcombine.low %v553_v57, %v555_v56 }
 0x1d8   : > { %2506 = vmatprep.subr.msk.bf16.mxu1 %vm511_vm2, %v2317_v58  ;;  %v815_v63 = vsel %vm511_vm2, %v2317_v58, 0  ;;  %v3674_v58 = vld [vmem:[%s3461_s18 + $0x8] sm:$0xf] }
 0x1d9   : > { %2419 = vmatpush3.bf16.xpose.msra.mxu0 %v751_v59  ;;  %v559_v61 = vpop.permute.xlu1 %558  ;;  %v557_v62 = vpop.permute.xlu0 %556 }
 0x1da   : > { %v2318_v0 = vcombine.low %v557_v62, %v559_v61  ;;  %v3682_v62 = vld [vmem:[#allocation3 + $0x40] sm:$0xff] }
 0x1dc   : > { %2413 = vmatmul.mubr.msk.bf16.vlgmr.msra.gmra.mrb[4].mxu1 %vm511_vm2, %v595_v60  ;;  %v818_v3 = vsel %vm511_vm2, %v2318_v0, 0 }
 0x1dd   : > { %2425 = vmatpush3.bf16.xpose.msra.mxu1 %v815_v63  ;;  %2428 = vmatprep.mubr.msk.bf16.mxu1 %vm511_vm2, %v598_v1 }
 0x1de   : > { %2507 = vmatprep.subr.msk.bf16.mxu1 %vm511_vm2, %v2318_v0  ;;  %v3690_v0 = vld [vmem:[#allocation3 + $0x8] sm:$0xff] }
 0x1e0   : > { %2421 = vmatmul.mubr.msk.bf16.vlgmr.msra.gmra.mrb[0].mxu0 %vm511_vm2, %v597_v2 }
 0x1e5   : > { %2427 = vmatpush3.bf16.xpose.msra.mxu1 %v818_v3 }
 0x1ec   : > { %2429 = vmatmul.mubr.msk.bf16.vlgmr.msra.gmra.mrb[8].mxu1 %vm511_vm2, %v599_v4 }
 0x23b   : > { %v3521_v5 = vpop.f32.mrb[0].mxu1 }
 0x23c   : > { %v3523_v6 = vpop.f32.mrb[1].mxu1  ;;  %v892_v22 = vsel %vm885_vm3, %v3521_v5, -inf }
 0x23d   : > { %v3525_v7 = vpop.f32.mrb[2].mxu1  ;;  %v886_v8 = vsel %vm885_vm3, %v3523_v6, -inf }
 0x23e   : > { %v3529_v9 = vpop.f32.mrb[3].mxu1  ;;  %887 = vmax.xlane.f32.xlu1 %v886_v8  ;;  %v895_v29 = vsel %vm885_vm3, %v3525_v7, -inf }
 0x23f   : > { %v889_v26 = vsel %vm885_vm3, %v3529_v9, -inf }
 0x2af   : > { %v3547_v11 = vpop.f32.mrb[4].mxu1 }
 0x2b0   : > { %v3549_v12 = vpop.f32.mrb[5].mxu1  ;;  %v904_v13 = vsel %vm885_vm3, %v3547_v11, -inf }
 0x2b1   : > { %905 = vmax.xlane.f32.xlu0 %v904_v13  ;;  %v3553_v14 = vpop.f32.mrb[6].mxu1  ;;  %v898_v18 = vsel %vm885_vm3, %v3549_v12, -inf }
 0x2b2   : > { %v3555_v15 = vpop.f32.mrb[7].mxu1  ;;  %v907_v23 = vsel %vm885_vm3, %v3553_v14, -inf }
 0x2b3   : > { %v901_v16 = vsel %vm885_vm3, %v3555_v15, -inf  ;;  %v3559_v17 = vpop.f32.mrb[0].mxu0 }
 0x2b4   : > { %902 = vmax.xlane.f32.xlu1 %v901_v16  ;;  %v3563_v19 = vpop.f32.mrb[1].mxu0  ;;  %v916_v27 = vsel %vm885_vm3, %v3559_v17, -inf  ;;  %v3710_v16 = vld [vmem:[#allocation3 + $0x18] sm:$0xff] }
 0x2b5   : > { %899 = vmax.xlane.f32.xlu0 %v898_v18  ;;  %v3565_v20 = vpop.f32.mrb[2].mxu0  ;;  %v910_v24 = vsel %vm885_vm3, %v3563_v19, -inf }
 0x2b6   : > { %v3567_v21 = vpop.f32.mrb[3].mxu0  ;;  %v919_v37 = vsel %vm885_vm3, %v3565_v20, -inf }
 0x2b7   : > { %v913_v33 = vsel %vm885_vm3, %v3567_v21, -inf }
 0x2b8   : > { %893 = vmax.xlane.f32.xlu1 %v892_v22 }
 0x2b9   : > { %908 = vmax.xlane.f32.xlu0 %v907_v23 }
 0x2bc   : > { %911 = vmax.xlane.f32.xlu1 %v910_v24 }
 0x2bd   : > { %890 = vmax.xlane.f32.xlu0 %v889_v26  ;;  %v3723_v26 = vld [vmem:[#allocation3 + $0x70] sm:$0xff] }
 0x2bf   : > { %v3611_v28 = vpop.f32.mrb[8].mxu1 }
 0x2c0   : > { %917 = vmax.xlane.f32.xlu1 %v916_v27  ;;  %v3615_v30 = vpop.f32.mrb[9].mxu1  ;;  %v928_v31 = vsel %vm885_vm3, %v3611_v28, -inf  ;;  %v563_v27 = vld [vmem:[%s3461_s18 + $0xc] sm:$0xf] }
 0x2c1   : > { %896 = vmax.xlane.f32.xlu0 %v895_v29  ;;  %v3619_v32 = vpop.f32.mrb[10].mxu1  ;;  %v922_v36 = vsel %vm885_vm3, %v3615_v30, -inf  ;;  %v3730_v29 = vld [vmem:[#allocation3 + $0x48] sm:$0xff] }
 0x2c2   : > { %v3623_v34 = vpop.f32.mrb[11].mxu1  ;;  %v931_v42 = vsel %vm885_vm3, %v3619_v32, -inf }
 0x2c3   : > { %v925_v39 = vsel %vm885_vm3, %v3623_v34, -inf }
 0x2c4   : > { %929 = vmax.xlane.f32.xlu1 %v928_v31 }
 0x2c5   : > { %914 = vmax.xlane.f32.xlu0 %v913_v33 }
 0x2c8   : > { %923 = vmax.xlane.f32.xlu1 %v922_v36 }
 0x2c9   : > { %920 = vmax.xlane.f32.xlu0 %v919_v37  ;;  %v3740_v37 = vld [vmem:[#allocation3 + $0x60] sm:$0xff] }
 0x2cb   : > { %v888_v40 = vpop.xlane.xlu1 %887 }
 0x2cc   : > { %v3634_v41 = vmax.f32 %v3629_v38, %v888_v40  ;;  %v561_v40 = vld [vmem:[%s3461_s18 + $0x4] sm:$0xf] }
 0x2cd   : > { %926 = vmax.xlane.f32.xlu0 %v925_v39 }
 0x2ce   : > { %1643 = vst.msk [vmem:[#allocation3] sm:$0xff] %vm478_vm4, %v3634_v41 }
 0x2d1   : > { %932 = vmax.xlane.f32.xlu0 %v931_v42  ;;  %v3750_v42 = vld [vmem:[#allocation3 + $0x58] sm:$0xff] }
 0x33e   : > { %v906_v44 = vpop.xlane.xlu0 %905 }
 0x33f   : > { %v3643_v45 = vmax.f32 %v3640_v43, %v906_v44 }
 0x341   : > { %v956_v48 = vsub.f32 %v3640_v43, %v3643_v45  ;;  %1649 = vst.msk [vmem:[#allocation3 + $0x30] sm:$0xff] %vm478_vm4, %v3643_v45  ;;  %v903_v49 = vpop.xlane.xlu1 %902 }
 0x342   : > { %v3654_v50 = vmax.f32 %v3645_v46, %v903_v49  ;;  %v900_v51 = vpop.xlane.xlu0 %899 }
 0x343   : > { %v3657_v52 = vmax.f32 %v3647_v47, %v900_v51 }
 0x344   : > { %1648 = vst.msk [vmem:[#allocation3 + $0x28] sm:$0xff] %vm478_vm4, %v3654_v50  ;;  %1025 = vperm.xlu0 %2668, %v3654_v50  }
 0x345   : > { %v954_v56 = vsub.f32 %v3647_v47, %v3657_v52  ;;  %1647 = vst.msk [vmem:[#allocation3 + $0x20] sm:$0xff] %vm478_vm4, %v3657_v52  ;;  %v894_v57 = vpop.xlane.xlu1 %893  ;;  %1020 = vperm.xlu1 %2667, %v3657_v52  }
 0x346   : > { %v3677_v59 = vmax.f32 %v3659_v53, %v894_v57  ;;  %v909_v60 = vpop.xlane.xlu0 %908 }
 0x347   : > { %v3680_v61 = vmax.f32 %v3666_v55, %v909_v60 }
 0x348   : > { %1645 = vst.msk [vmem:[#allocation3 + $0x10] sm:$0xff] %vm478_vm4, %v3677_v59  ;;  %572 = vrot.lane.b32.xlu0 %v3674_v58, %s3053_s21 }
 0x349   : > { %1650 = vst.msk [vmem:[#allocation3 + $0x38] sm:$0xff] %vm478_vm4, %v3680_v61  ;;  %v912_v2 = vpop.xlane.xlu1 %911  ;;  %1030 = vperm.xlu1 %2667, %v3643_v45  }
 0x34a   : > { %v3698_v3 = vmax.f32 %v3682_v62, %v912_v2  ;;  %v891_v4 = vpop.xlane.xlu0 %890 }
 0x34b   : > { %v3701_v8 = vmax.f32 %v3690_v0, %v891_v4  ;;  %v3768_v4 = vld [vmem:[#allocation3 + $0x68] sm:$0xff] }
 0x34c   : > { %1651 = vst.msk [vmem:[#allocation3 + $0x40] sm:$0xff] %vm478_vm4, %v3698_v3  ;;  %1040 = vperm.xlu0 %2668, %v3698_v3  }
 0x34d   : > { %1644 = vst.msk [vmem:[#allocation3 + $0x8] sm:$0xff] %vm478_vm4, %v3701_v8  ;;  %v918_v22 = vpop.xlane.xlu1 %917  ;;  %1035 = vperm.xlu1 %2667, %v3680_v61  }
 0x34e   : > { %v3718_v23 = vmax.f32 %v3703_v10, %v918_v22  ;;  %v897_v24 = vpop.xlane.xlu0 %896 }
 0x34f   : > { %v3721_v25 = vmax.f32 %v3710_v16, %v897_v24 }
 0x350   : > { %1653 = vst.msk [vmem:[#allocation3 + $0x50] sm:$0xff] %vm478_vm4, %v3718_v23  ;;  %1050 = vperm.xlu0 %2668, %v3718_v23  }
 0x351   : > { %1646 = vst.msk [vmem:[#allocation3 + $0x18] sm:$0xff] %vm478_vm4, %v3721_v25  ;;  %v930_v33 = vpop.xlane.xlu1 %929  ;;  %1000 = vperm.xlu1 %2667, %v3634_v41  }
 0x352   : > { %v3738_v35 = vmax.f32 %v3723_v26, %v930_v33  ;;  %v915_v36 = vpop.xlane.xlu0 %914  ;;  %v560_v33 = vld [vmem:[%s3461_s18] sm:$0xf] }
 0x353   : > { %v3743_v39 = vmax.f32 %v3730_v29, %v915_v36 }
 0x354   : > { %1657 = vst.msk [vmem:[#allocation3 + $0x70] sm:$0xff] %vm478_vm4, %v3738_v35  ;;  %1070 = vperm.xlu0 %2668, %v3738_v35  }
 0x355   : > { %v924_v44 = vpop.xlane.xlu1 %923  ;;  %1005 = vperm.xlu1 %2667, %v3701_v8   ;;  %1652 = vst.msk [vmem:[#allocation3 + $0x48] sm:$0xff] %vm478_vm4, %v3743_v39 }
 0x356   : > { %v3758_v51 = vmax.f32 %v3740_v37, %v924_v44  ;;  %v921_v57 = vpop.xlane.xlu0 %920  ;;  %v3779_v44 = vld [vmem:[#allocation3 + $0x78] sm:$0xff] }
 0x357   : > { %v3761_v60 = vmax.f32 %v3750_v42, %v921_v57  ;;  %v2321_v57 = vcombine.low %v560_v33, %v561_v40 }
 0x358   : > { %1655 = vst.msk [vmem:[#allocation3 + $0x60] sm:$0xff] %vm478_vm4, %v3758_v51  ;;  %1060 = vperm.xlu0 %2668, %v3758_v51  }
 0x359   : > { %1010 = vperm.xlu1 %2667, %v3677_v59   ;;  %1654 = vst.msk [vmem:[#allocation3 + $0x58] sm:$0xff] %vm478_vm4, %v3761_v60  ;;  %2432 = vmatprep.subr.bf16.mxu0 %v2321_v57 }
 0x35a   : > { %v927_v24 = vpop.xlane.xlu0 %926  ;;  %2433 = vmatpush3.bf16.msra.mxu0 %v2321_v57 }
 0x35b   : > { %v3777_v36 = vmax.f32 %v3768_v4, %v927_v24 }
 0x35c   : > { %576 = vrot.lane.b32.xlu0 %v560_v33, %s3054_s7 }
 0x35d   : > { %1015 = vperm.xlu1 %2667, %v3721_v25   ;;  %1656 = vst.msk [vmem:[#allocation3 + $0x68] sm:$0xff] %vm478_vm4, %v3777_v36 }
 0x35e   : > { %v933_v22 = vpop.xlane.xlu0 %932 }
 0x35f   : > { %v3788_v2 = vmax.f32 %v3779_v44, %v933_v22  ;;  %v2322_v22 = vcombine.low %v3674_v58, %v563_v27 }
 0x360   : > { %580 = vrot.lane.b32.xlu0 %v3674_v58, %s3054_s7 }
 0x361   : > { %568 = vrot.lane.b32.xlu1 %v560_v33, %s3053_s21  ;;  %1658 = vst.msk [vmem:[#allocation3 + $0x78] sm:$0xff] %vm478_vm4, %v3788_v2  ;;  %2434 = vmatprep.subr.bf16.mxu0 %v2322_v22 }
 0x362   : > { %2435 = vmatpush3.bf16.msra.mxu0 %v2322_v22 }
 0x364   : > { %584 = vrot.lane.b32.xlu0 %v560_v33, %s3055_s30 }
 0x365   : > { %570 = vrot.lane.b32.xlu1 %v561_v40, %s3053_s21 }
 0x368   : > { %588 = vrot.lane.b32.xlu0 %v3674_v58, %s3055_s30 }
 0x369   : > { %574 = vrot.lane.b32.xlu1 %v563_v27, %s3053_s21 }
 0x36d   : > { %1045 = vperm.xlu1 %2667, %v3743_v39  }
 0x371   : > { %1055 = vperm.xlu1 %2667, %v3761_v60  }
 0x375   : > { %1075 = vperm.xlu1 %2667, %v3788_v2  }
 0x379   : > { %1065 = vperm.xlu1 %2667, %v3777_v36  }
 0x37d   : > { %578 = vrot.lane.b32.xlu1 %v561_v40, %s3054_s7 }
 0x381   : > { %582 = vrot.lane.b32.xlu1 %v563_v27, %s3054_s7 }
 0x385   : > { %586 = vrot.lane.b32.xlu1 %v561_v40, %s3055_s30 }
 0x389   : > { %590 = vrot.lane.b32.xlu1 %v563_v27, %s3055_s30 }
 0x3c3   : > { %v1026_v58 = vpop.permute.xlu0 %1025 }
 0x3c4   : > { %v1083_v33 = vsub.f32 %v3555_v15, %v1026_v58  ;;  %v1021_v57 = vpop.permute.xlu1 %1020 }
 0x3c5   : > { %v1082_v22 = vsub.f32 %v3549_v12, %v1021_v57 }
 0x3c6   : > { %v1104_v24 = vmul.f32 1.442695, %v1083_v33 }
 0x3c7   : > { %v1102_v13 = vmul.f32 1.442695, %v1082_v22  ;;  %v3815_v63 = vpop.permute.xlu0 %572 }
 0x3c8   : > { %2671 = vpow2.f32 %v1104_v24  ;;  %v1031_v54 = vpop.permute.xlu1 %1030 }
 0x3c9   : > { %2673 = vpow2.f32 %v1102_v13  ;;  %v1084_v49 = vsub.f32 %v3547_v11, %v1031_v54 }
 0x3cb   : > { %v1106_v31 = vmul.f32 1.442695, %v1084_v49  ;;  %v1041_v40 = vpop.permute.xlu0 %1040 }
 0x3cc   : > { %v1036_v18 = vpop.permute.xlu1 %1035 }
 0x3cd   : > { %2675 = vpow2.f32 %v1106_v31  ;;  %v1085_v27 = vsub.f32 %v3553_v14, %v1036_v18 }
 0x3cf   : > { %v1108_v1 = vmul.f32 1.442695, %v1085_v27  ;;  %v1051_v22 = vpop.permute.xlu0 %1050 }
 0x3d0   : > { %v1001_v15 = vpop.permute.xlu1 %1000 }
 0x3d1   : > { %2677 = vpow2.f32 %v1108_v1  ;;  %v1078_v12 = vsub.f32 %v3523_v6, %v1001_v15  ;;  %v1086_v6 = vsub.f32 %v3563_v19, %v1041_v40 }
 0x3d2   : > { %v2672_v58 = vpop.eup %2671 }
 0x3d3   : > { %v2674_v33 = vpop.eup %2673  ;;  %v1094_v24 = vmul.f32 1.442695, %v1078_v12  ;;  %v1141_v57 = vsel %vm885_vm3, %v2672_v58, 0.0  ;;  %v1071_v15 = vpop.permute.xlu0 %1070 }
 0x3d4   : > { %1142 = vadd.xlane.f32.xlu1 %v1141_v57  ;;  %v1006_v13 = vpop.permute.xlu1 %1005  ;;  %v1138_v11 = vsel %vm885_vm3, %v2674_v33, 0.0  ;;  %v1176_v54 = vpack.c.bf16 %v2672_v58, %v2674_v33  ;;  %v1110_v58 = vmul.f32 1.442695, %v1086_v6 }
 0x3d5   : > { %2679 = vpow2.f32 %v1094_v24  ;;  %v1079_v14 = vsub.f32 %v3529_v9, %v1006_v13  ;;  %1139 = vadd.xlane.f32.xlu0 %v1138_v11  ;;  %v1088_v9 = vsub.f32 %v3559_v17, %v1051_v22 }
 0x3d6   : > { %2444 = vmatprep.mubr.msk.bf16.mxu1 %vm885_vm3, %v1176_v54 }
 0x3d7   : > { %v3824_v1 = vpop.eup %2675  ;;  %v1096_v18 = vmul.f32 1.442695, %v1079_v14  ;;  %v1114_v11 = vmul.f32 1.442695, %v1088_v9  ;;  %v1061_v14 = vpop.permute.xlu0 %1060 }
 0x3d8   : > { %v1011_v31 = vpop.permute.xlu1 %1010  ;;  %v1144_v49 = vsel %vm885_vm3, %v3824_v1, 0.0 }
 0x3d9   : > { %2681 = vpow2.f32 %v1096_v18  ;;  %v1080_v27 = vsub.f32 %v3521_v5, %v1011_v31  ;;  %1145 = vadd.xlane.f32.xlu0 %v1144_v49  ;;  %v1092_v5 = vsub.f32 %v3611_v28, %v1071_v15 }
 0x3db   : > { %v2678_v12 = vpop.eup %2677  ;;  %v1098_v33 = vmul.f32 1.442695, %v1080_v27  ;;  %v1122_v18 = vmul.f32 1.442695, %v1092_v5 }
 0x3dc   : > { %v1016_v24 = vpop.permute.xlu1 %1015  ;;  %v1147_v57 = vsel %vm885_vm3, %v2678_v12, 0.0  ;;  %v1177_v19 = vpack.c.bf16 %v2678_v12, %v3824_v1  ;;  %v1090_v1 = vsub.f32 %v3615_v30, %v1061_v14 }
 0x3dd   : > { %2683 = vpow2.f32 %v1098_v33  ;;  %v1081_v40 = vsub.f32 %v3525_v7, %v1016_v24  ;;  %1148 = vadd.xlane.f32.xlu0 %v1147_v57 }
 0x3de   : > { %2685 = vpow2.f32 %v1110_v58  ;;  %v1118_v15 = vmul.f32 1.442695, %v1090_v1  ;;  %v577_v1 = vpop.permute.xlu0 %576 }
 0x3df   : > { %v2680_v13 = vpop.eup %2679  ;;  %v1100_v54 = vmul.f32 1.442695, %v1081_v40 }
 0x3e0   : > { %v569_v6 = vpop.permute.xlu1 %568  ;;  %v1126_v17 = vsel %vm885_vm3, %v2680_v13, 0.0 }
 0x3e1   : > { %2687 = vpow2.f32 %v1100_v54  ;;  %1127 = vadd.xlane.f32.xlu1 %v1126_v17 }
 0x3e2   : > { %2689 = vpow2.f32 %v1114_v11 }
 0x3e3   : > { %v2682_v22 = vpop.eup %2681  ;;  %2691 = vpow2.f32 %v1122_v18 }
 0x3e4   : > { %v571_v31 = vpop.permute.xlu1 %570  ;;  %v1129_v7 = vsel %vm885_vm3, %v2682_v22, 0.0  ;;  %v1174_v49 = vpack.c.bf16 %v2682_v22, %v2680_v13  ;;  %2693 = vpow2.f32 %v1118_v15 }
 0x3e5   : > { %v2325_v27 = vcombine.low %v569_v6, %v571_v31  ;;  %1130 = vadd.xlane.f32.xlu0 %v1129_v7 }
 0x3e6   : > { %2436 = vmatprep.mubr.msk.bf16.mxu0 %vm885_vm3, %v1174_v49 }
 0x3e7   : > { %v2684_v28 = vpop.eup %2683  ;;  %2440 = vmatprep.subr.bf16.mxu1 %v2325_v27 }
 0x3e8   : > { %2441 = vmatpush3.bf16.msra.mxu1 %v2325_v27  ;;  %v575_v12 = vpop.permute.xlu1 %574  ;;  %v1132_v58 = vsel %vm885_vm3, %v2684_v28, 0.0  ;;  %v2686_v9 = vpop.eup %2685 }
 0x3e9   : > { %v2326_v33 = vcombine.low %v3815_v63, %v575_v12  ;;  %1133 = vadd.xlane.f32.xlu1 %v1132_v58  ;;  %v1150_v57 = vsel %vm885_vm3, %v2686_v9, 0.0  ;;  %v974_v12 = vmul.f32 1.442695, %v954_v56 }
 0x3eb   : > { %v2688_v30 = vpop.eup %2687  ;;  %2442 = vmatprep.subr.bf16.mxu1 %v2326_v33 }
 0x3ec   : > { %2443 = vmatpush3.bf16.msra.mxu1 %v2326_v33  ;;  %v1046_v24 = vpop.permute.xlu1 %1045  ;;  %v1135_v40 = vsel %vm885_vm3, %v2688_v30, 0.0  ;;  %v1175_v13 = vpack.c.bf16 %v2688_v30, %v2684_v28  ;;  %v2690_v11 = vpop.eup %2689 }
 0x3ed   : > { %v1087_v5 = vsub.f32 %v3567_v21, %v1046_v24  ;;  %1151 = vadd.xlane.f32.xlu1 %v1150_v57  ;;  %1136 = vadd.xlane.f32.xlu0 %v1135_v40  ;;  %v1156_v14 = vsel %vm885_vm3, %v2690_v11, 0.0  ;;  %v3847_v6 = vpop.eup %2691 }
 0x3ee   : > { %2437 = vmatmul.mubr.msk.bf16.vlgmr.msra.gmra.mrb[4].mxu0 %vm885_vm3, %v1175_v13  ;;  %v1168_v21 = vsel %vm885_vm3, %v3847_v6, 0.0  ;;  %v2694_v31 = vpop.eup %2693 }
 0x3ef   : > { %v1112_v54 = vmul.f32 1.442695, %v1087_v5  ;;  %2445 = vmatmul.mubr.msk.bf16.vlgmr.msra.gmra.mrb[12].mxu1 %vm885_vm3, %v1177_v19  ;;  %v1162_v27 = vsel %vm885_vm3, %v2694_v31, 0.0  ;;  %v4155_v5 = vsub.f32 %v3666_v55, %v3680_v61 }
 0x3f0   : > { %v1056_v63 = vpop.permute.xlu1 %1055 }
 0x3f1   : > { %2695 = vpow2.f32 %v1112_v54  ;;  %v1089_v17 = vsub.f32 %v3565_v20, %v1056_v63  ;;  %1157 = vadd.xlane.f32.xlu1 %v1156_v14  ;;  %v581_v20 = vpop.permute.xlu0 %580  ;;  %v980_v54 = vmul.f32 1.442695, %v4155_v5 }
 0x3f3   : > { %v1116_v22 = vmul.f32 1.442695, %v1089_v17 }
 0x3f4   : > { %v1076_v18 = vpop.permute.xlu1 %1075 }
 0x3f5   : > { %2697 = vpow2.f32 %v1116_v22  ;;  %v1093_v7 = vsub.f32 %v3619_v32, %v1076_v18  ;;  %1169 = vadd.xlane.f32.xlu1 %v1168_v21  ;;  %v585_v56 = vpop.permute.xlu0 %584 }
 0x3f7   : > { %v1124_v19 = vmul.f32 1.442695, %v1093_v7 }
 0x3f8   : > { %v1066_v49 = vpop.permute.xlu1 %1065 }
 0x3f9   : > { %2699 = vpow2.f32 %v1124_v19  ;;  %v1091_v28 = vsub.f32 %v3623_v34, %v1066_v49  ;;  %1163 = vadd.xlane.f32.xlu1 %v1162_v27  ;;  %v978_v34 = vmul.f32 1.442695, %v956_v48  ;;  %v589_v63 = vpop.permute.xlu0 %588 }
 0x3fb   : > { %v2696_v15 = vpop.eup %2695  ;;  %v1120_v58 = vmul.f32 1.442695, %v1091_v28 }
 0x3fc   : > { %v579_v33 = vpop.permute.xlu1 %578  ;;  %v1153_v30 = vsel %vm885_vm3, %v2696_v15, 0.0  ;;  %v1178_v32 = vpack.c.bf16 %v2696_v15, %v2686_v9 }
 0x3fd   : > { %2701 = vpow2.f32 %v1120_v58  ;;  %v2329_v24 = vcombine.low %v577_v1, %v579_v33  ;;  %1154 = vadd.xlane.f32.xlu0 %v1153_v30 }
 0x3fe   : > { %2452 = vmatprep.mubr.msk.bf16.mxu0 %vm885_vm3, %v1178_v32  ;;  %2703 = vpow2.f32 %v974_v12 }
 0x3ff   : > { %v2698_v57 = vpop.eup %2697  ;;  %2448 = vmatprep.subr.bf16.mxu0 %v2329_v24  ;;  %2705 = vpow2.f32 %v978_v34  ;;  %v1188_v34 = vld [vmem:[#allocation4 + $0x30] sm:$0xff] }
 0x400   : > { %2449 = vmatpush3.bf16.msra.mxu0 %v2329_v24  ;;  %v583_v47 = vpop.permute.xlu1 %582  ;;  %v1159_v52 = vsel %vm885_vm3, %v2698_v57, 0.0  ;;  %v1179_v40 = vpack.c.bf16 %v2698_v57, %v2690_v11  ;;  %2707 = vpow2.f32 %v980_v54  ;;  %v4156_v11 = vsub.f32 %v3690_v0, %v3701_v8 }
 0x401   : > { %v2330_v13 = vcombine.low %v581_v20, %v583_v47  ;;  %1160 = vadd.xlane.f32.xlu0 %v1159_v52  ;;  %v1189_v52 = vld [vmem:[#allocation4 + $0x38] sm:$0xff]  ;;  %v4162_v54 = vsub.f32 %v3703_v10, %v3718_v23  ;;  %v1184_v10 = vld [vmem:[#allocation4 + $0x10] sm:$0xff]  ;;  %v4164_v23 = vsub.f32 %v3740_v37, %v3758_v51 }
 0x402   : > { %v968_v17 = vmul.f32 1.442695, %v4156_v11 }
 0x403   : > { %v2700_v9 = vpop.eup %2699  ;;  %2450 = vmatprep.subr.bf16.mxu0 %v2330_v13 }
 0x404   : > { %2451 = vmatpush3.bf16.msra.mxu0 %v2330_v13  ;;  %v587_v43 = vpop.permute.xlu1 %586  ;;  %v1181_v45 = vpack.c.bf16 %v2700_v9, %v3847_v6  ;;  %2709 = vpow2.f32 %v968_v17  ;;  %v4157_v6 = vsub.f32 %v3710_v16, %v3721_v25  ;;  %v1171_v8 = vsel %vm885_vm3, %v2700_v9, 0.0  ;;  %v1182_v9 = vld [vmem:[#allocation4] sm:$0xff] }
 0x405   : > { %v2333_v48 = vcombine.low %v585_v56, %v587_v43  ;;  %v950_v16 = vsub.f32 %v3629_v38, %v3634_v41  ;;  %v4159_v25 = vsub.f32 %v3645_v46, %v3654_v50  ;;  %v4161_v38 = vsub.f32 %v3682_v62, %v3698_v3 }
 0x406   : > { %v972_v0 = vmul.f32 1.442695, %v4157_v6  ;;  %v986_v43 = vmul.f32 1.442695, %v4162_v54 }
 0x407   : > { %v2702_v14 = vpop.eup %2701  ;;  %2453 = vmatmul.mubr.msk.bf16.vlgmr.msra.gmra.mrb[8].mxu0 %vm885_vm3, %v1179_v40  ;;  %2456 = vmatprep.subr.bf16.mxu1 %v2333_v48  ;;  %v976_v49 = vmul.f32 1.442695, %v4159_v25  ;;  %v966_v28 = vmul.f32 1.442695, %v950_v16  ;;  %v982_v41 = vmul.f32 1.442695, %v4161_v38  ;;  %v4165_v38 = vsub.f32 %v3750_v42, %v3761_v60 }
 0x408   : > { %2457 = vmatpush3.bf16.msra.mxu1 %v2333_v48  ;;  %v591_v22 = vpop.permute.xlu1 %590  ;;  %v1165_v55 = vsel %vm885_vm3, %v2702_v14, 0.0  ;;  %v1180_v61 = vpack.c.bf16 %v2702_v14, %v2694_v31  ;;  %v2704_v18 = vpop.eup %2703  ;;  %2711 = vpow2.f32 %v972_v0  ;;  %v4158_v31 = vsub.f32 %v3730_v29, %v3743_v39 }
 0x409   : > { %v2334_v21 = vcombine.low %v589_v63, %v591_v22  ;;  %1166 = vadd.xlane.f32.xlu0 %v1165_v55  ;;  %v2706_v1 = vpop.eup %2705  ;;  %v4160_v29 = vsub.f32 %v3659_v53, %v3677_v59  ;;  %v1187_v53 = vld [vmem:[#allocation4 + $0x28] sm:$0xff]  ;;  %v1186_v59 = vld [vmem:[#allocation4 + $0x20] sm:$0xff]  ;;  %v4163_v14 = vsub.f32 %v3723_v26, %v3738_v35 }
 0x40a   : > { %1537 = vperm.xlu1 %2667, %v2704_v18   ;;  %2460 = vmatprep.mubr.msk.bf16.mxu1 %vm885_vm3, %v1180_v61  ;;  %v984_v7 = vmul.f32 1.442695, %v4158_v31  ;;  %v2708_v19 = vpop.eup %2707  ;;  %v1202_v32 = vmul.f32 %v2704_v18, %v1186_v59  ;;  %v1204_v62 = vmul.f32 %v2706_v1, %v1188_v34  ;;  %v1183_v63 = vld [vmem:[#allocation4 + $0x8] sm:$0xff]  ;;  %v1190_v31 = vld [vmem:[#allocation4 + $0x40] sm:$0xff] }
 0x40b   : > { %2458 = vmatprep.subr.bf16.mxu1 %v2334_v21  ;;  %v970_v39 = vmul.f32 1.442695, %v4160_v29  ;;  %v1205_v40 = vmul.f32 %v2708_v19, %v1189_v52  ;;  %v994_v11 = vmul.f32 1.442695, %v4163_v14 }
 0x40c   : > { %2459 = vmatpush3.bf16.msra.mxu1 %v2334_v21  ;;  %2713 = vpow2.f32 %v984_v7  ;;  %v990_v21 = vmul.f32 1.442695, %v4164_v23 }
 0x40d   : > { %1172 = vadd.xlane.f32.xlu0 %v1171_v8  ;;  %2715 = vpow2.f32 %v976_v49 }
 0x40e   : > { %1547 = vperm.xlu1 %2667, %v2706_v1   ;;  %v2710_v27 = vpop.eup %2709  ;;  %2717 = vpow2.f32 %v966_v28  ;;  %v1185_v1 = vld [vmem:[#allocation4 + $0x18] sm:$0xff] }
 0x40f   : > { %2461 = vmatmul.mubr.msk.bf16.vlgmr.msra.gmra.mrb[16].mxu1 %vm885_vm3, %v1181_v45  ;;  %2719 = vpow2.f32 %v970_v39  ;;  %v1199_v55 = vmul.f32 %v2710_v27, %v1183_v63 }
 0x410   : > { %2721 = vpow2.f32 %v982_v41  ;;  %v988_v41 = vmul.f32 1.442695, %v4165_v38 }
 0x411   : > { %2723 = vpow2.f32 %v986_v43 }
 0x412   : > { %1552 = vperm.xlu1 %2667, %v2708_v19   ;;  %v3887_v20 = vpop.eup %2711 }
 0x413   : > { %v1201_v37 = vmul.f32 %v3887_v20, %v1185_v1 }
 0x416   : > { %1522 = vperm.xlu1 %2667, %v2710_v27   ;;  %v3893_v15 = vpop.eup %2713  ;;  %v1192_v27 = vld [vmem:[#allocation4 + $0x50] sm:$0xff] }
 0x417   : > { %v2716_v46 = vpop.eup %2715 }
 0x418   : > { %v2718_v50 = vpop.eup %2717  ;;  %v1203_v33 = vmul.f32 %v2716_v46, %v1187_v53  ;;  %v1196_v53 = vld [vmem:[#allocation4 + $0x70] sm:$0xff] }
 0x419   : > { %v2720_v12 = vpop.eup %2719  ;;  %v1198_v45 = vmul.f32 %v2718_v50, %v1182_v9  ;;  %v1191_v9 = vld [vmem:[#allocation4 + $0x48] sm:$0xff] }
 0x41a   : > { %1532 = vperm.xlu1 %2667, %v3887_v20   ;;  %v2722_v58 = vpop.eup %2721  ;;  %v1200_v26 = vmul.f32 %v2720_v12, %v1184_v10 }
 0x41b   : > { %v1206_v51 = vmul.f32 %v2722_v58, %v1190_v31  ;;  %v2724_v16 = vpop.eup %2723  ;;  %v1197_v31 = vld [vmem:[#allocation4 + $0x78] sm:$0xff] }
 0x41c   : > { %v1208_v20 = vmul.f32 %v2724_v16, %v1192_v27 }
 0x41e   : > { %1562 = vperm.xlu1 %2667, %v3893_v15  }
 0x423   : > { %1542 = vperm.xlu0 %2668, %v2716_v46  }
 0x427   : > { %1517 = vperm.xlu0 %2668, %v2718_v50  }
 0x42b   : > { %1527 = vperm.xlu0 %2668, %v2720_v12  }
 0x42f   : > { %1557 = vperm.xlu0 %2668, %v2722_v58  }
 0x461   : > { %v1143_v30 = vpop.xlane.xlu1 %1142 }
 0x462   : > { %v1219_v24 = vadd.f32 %v1203_v33, %v1143_v30  ;;  %v1140_v57 = vpop.xlane.xlu0 %1139 }
 0x463   : > { %v1218_v47 = vadd.f32 %v1202_v32, %v1140_v57  ;;  %v1194_v57 = vld [vmem:[#allocation4 + $0x60] sm:$0xff] }
 0x464   : > { %1236 = vst.msk [vmem:[#allocation4 + $0x28] sm:$0xff] %vm478_vm4, %v1219_v24 }
 0x465   : > { %1235 = vst.msk [vmem:[#allocation4 + $0x20] sm:$0xff] %vm478_vm4, %v1218_v47 }
 0x466   : > { %v1146_v3 = vpop.xlane.xlu0 %1145 }
 0x467   : > { %v1220_v56 = vadd.f32 %v1204_v62, %v1146_v3  ;;  %v4166_v62 = vsub.f32 %v3768_v4, %v3777_v36  ;;  %v4167_v4 = vsub.f32 %v3779_v44, %v3788_v2 }
 0x469   : > { %1237 = vst.msk [vmem:[#allocation4 + $0x30] sm:$0xff] %vm478_vm4, %v1220_v56  ;;  %v992_v3 = vmul.f32 1.442695, %v4166_v62  ;;  %v996_v36 = vmul.f32 1.442695, %v4167_v4 }
 0x46a   : > { %v1149_v13 = vpop.xlane.xlu0 %1148 }
 0x46b   : > { %v1221_v5 = vadd.f32 %v1205_v40, %v1149_v13  ;;  %v1667_v35 = vld [vmem:[#allocation4 + $0x28] sm:$0xff]  ;;  %v1815_v40 = vld [vmem:[%s3463_s25 + $0x4] sm:$0xf] }
 0x46c   : > { %v1666_v61 = vld [vmem:[#allocation4 + $0x20] sm:$0xff]  ;;  %2508 = vmatprep.subr.msk.bf16.mxu0 %vm1824_vm5, %v1815_v40  ;;  %v1826_v54 = vsel %vm1824_vm5, %v1815_v40, 0 }
 0x46d   : > { %1238 = vst.msk [vmem:[#allocation4 + $0x38] sm:$0xff] %vm478_vm4, %v1221_v5  ;;  %2465 = vmatpush3.bf16.msra.mxu0 %v1826_v54 }
 0x46e   : > { %v1128_v48 = vpop.xlane.xlu1 %1127 }
 0x46f   : > { %v1214_v17 = vadd.f32 %v1198_v45, %v1128_v48  ;;  %v1207_v48 = vmul.f32 %v3893_v15, %v1191_v9  ;;  %v3939_v15 = vld [vmem:[%s3463_s25] sm:$0xf] }
 0x470   : > { %v1668_v22 = vld [vmem:[#allocation4 + $0x30] sm:$0xff]  ;;  %2509 = vmatprep.subr.msk.bf16.mxu0 %vm1824_vm5, %v3939_v15 }
 0x471   : > { %1231 = vst.msk [vmem:[#allocation4] sm:$0xff] %vm478_vm4, %v1214_v17  ;;  %2725 = vrcp.f32 %v1668_v22 }
 0x472   : > { %v1131_v18 = vpop.xlane.xlu0 %1130  ;;  %2727 = vpow2.f32 %v994_v11  ;;  %v1193_v11 = vld [vmem:[#allocation4 + $0x58] sm:$0xff] }
 0x473   : > { %v1215_v6 = vadd.f32 %v1199_v55, %v1131_v18  ;;  %2729 = vrcp.f32 %v1666_v61 }
 0x474   : > { %v1669_v0 = vld [vmem:[#allocation4 + $0x38] sm:$0xff] }
 0x475   : > { %1232 = vst.msk [vmem:[#allocation4 + $0x8] sm:$0xff] %vm478_vm4, %v1215_v6  ;;  %2731 = vrcp.f32 %v1669_v0 }
 0x476   : > { %v1134_v8 = vpop.xlane.xlu1 %1133  ;;  %2733 = vpow2.f32 %v990_v21  ;;  %v1195_v21 = vld [vmem:[#allocation4 + $0x68] sm:$0xff] }
 0x477   : > { %v1216_v7 = vadd.f32 %v1200_v26, %v1134_v8  ;;  %2735 = vrcp.f32 %v1667_v35 }
 0x478   : > { %v1662_v19 = vld [vmem:[#allocation4] sm:$0xff] }
 0x479   : > { %1233 = vst.msk [vmem:[#allocation4 + $0x10] sm:$0xff] %vm478_vm4, %v1216_v7  ;;  %2737 = vrcp.f32 %v1662_v19 }
 0x47a   : > { %v1137_v25 = vpop.xlane.xlu0 %1136  ;;  %v1152_v49 = vpop.xlane.xlu1 %1151 }
 0x47b   : > { %v2726_v28 = vpop.eup %2725  ;;  %v1217_v29 = vadd.f32 %v1201_v37, %v1137_v25  ;;  %v1222_v39 = vadd.f32 %v1206_v51, %v1152_v49 }
 0x47c   : > { %1742 = vperm.xlu0 %2668, %v2726_v28   ;;  %v1663_v46 = vld [vmem:[#allocation4 + $0x8] sm:$0xff]  ;;  %v3919_v50 = vpop.eup %2727 }
 0x47d   : > { %1234 = vst.msk [vmem:[#allocation4 + $0x18] sm:$0xff] %vm478_vm4, %v1217_v29  ;;  %1239 = vst.msk [vmem:[#allocation4 + $0x40] sm:$0xff] %vm478_vm4, %v1222_v39  ;;  %2739 = vrcp.f32 %v1663_v46  ;;  %v2730_v12 = vpop.eup %2729  ;;  %v1212_v30 = vmul.f32 %v3919_v50, %v1196_v53 }
 0x47e   : > { %v1158_v58 = vpop.xlane.xlu1 %1157  ;;  %2741 = vpow2.f32 %v988_v41 }
 0x47f   : > { %v2732_v59 = vpop.eup %2731  ;;  %v1224_v33 = vadd.f32 %v1208_v20, %v1158_v58 }
 0x480   : > { %1747 = vperm.xlu1 %2667, %v2732_v59   ;;  %1732 = vperm.xlu0 %2668, %v2730_v12   ;;  %v1664_v42 = vld [vmem:[#allocation4 + $0x10] sm:$0xff]  ;;  %v2734_v60 = vpop.eup %2733 }
 0x481   : > { %1241 = vst.msk [vmem:[#allocation4 + $0x50] sm:$0xff] %vm478_vm4, %v1224_v33  ;;  %2743 = vrcp.f32 %v1664_v42  ;;  %v2736_v32 = vpop.eup %2735  ;;  %v1210_v56 = vmul.f32 %v2734_v60, %v1194_v57  ;;  %v1501_v33 = vld [vmem:[#allocation5 + $0x10] sm:$0xff] }
 0x482   : > { %v1170_v24 = vpop.xlane.xlu1 %1169 }
 0x483   : > { %v2738_v34 = vpop.eup %2737  ;;  %v1228_v47 = vadd.f32 %v1212_v30, %v1170_v24  ;;  %v1499_v30 = vld [vmem:[#allocation5] sm:$0xff]  ;;  %v1502_v24 = vld [vmem:[#allocation5 + $0x18] sm:$0xff] }
 0x484   : > { %1737 = vperm.xlu1 %2667, %v2736_v32   ;;  %1712 = vperm.xlu0 %2668, %v2738_v34   ;;  %v1665_v52 = vld [vmem:[#allocation4 + $0x18] sm:$0xff]  ;;  %v1670_v5 = vld [vmem:[#allocation4 + $0x40] sm:$0xff] }
 0x485   : > { %1245 = vst.msk [vmem:[#allocation4 + $0x70] sm:$0xff] %vm478_vm4, %v1228_v47  ;;  %2745 = vrcp.f32 %v1665_v52  ;;  %v1503_v32 = vld [vmem:[#allocation5 + $0x20] sm:$0xff]  ;;  %v1506_v34 = vld [vmem:[#allocation5 + $0x38] sm:$0xff]  ;;  %v1500_v47 = vld [vmem:[#allocation5 + $0x8] sm:$0xff] }
 0x486   : > { %v1164_v13 = vpop.xlane.xlu1 %1163  ;;  %2747 = vpow2.f32 %v992_v3  ;;  %v1504_v52 = vld [vmem:[#allocation5 + $0x28] sm:$0xff] }
 0x487   : > { %v2740_v43 = vpop.eup %2739  ;;  %v1226_v45 = vadd.f32 %v1210_v56, %v1164_v13  ;;  %2749 = vrcp.f32 %v1670_v5 }
 0x488   : > { %1717 = vperm.xlu1 %2667, %v2740_v43   ;;  %1567 = vperm.xlu0 %2668, %v2724_v16   ;;  %v2742_v63 = vpop.eup %2741  ;;  %2751 = vpow2.f32 %v996_v36  ;;  %v1672_v55 = vld [vmem:[#allocation4 + $0x50] sm:$0xff] }
 0x489   : > { %1243 = vst.msk [vmem:[#allocation4 + $0x60] sm:$0xff] %vm478_vm4, %v1226_v45  ;;  %v1209_v2 = vmul.f32 %v2742_v63, %v1193_v11  ;;  %2753 = vrcp.f32 %v1672_v55 }
 0x48a   : > { %v1155_v14 = vpop.xlane.xlu0 %1154  ;;  %v1538_v41 = vpop.permute.xlu1 %1537 }
 0x48b   : > { %v2744_v17 = vpop.eup %2743  ;;  %v1223_v22 = vadd.f32 %v1207_v48, %v1155_v14  ;;  %v1599_v13 = vmul.f32 %v1538_v41, %v1503_v32 }
 0x48c   : > { %1572 = vperm.xlu1 %2667, %v2742_v63   ;;  %1722 = vperm.xlu0 %2668, %v2744_v17   ;;  %v1676_v35 = vld [vmem:[#allocation4 + $0x70] sm:$0xff] }
 0x48d   : > { %1240 = vst.msk [vmem:[#allocation4 + $0x48] sm:$0xff] %vm478_vm4, %v1223_v22 }
 0x48e   : > { %v1161_v44 = vpop.xlane.xlu0 %1160 }
 0x48f   : > { %v2746_v61 = vpop.eup %2745  ;;  %v1225_v18 = vadd.f32 %v1209_v2, %v1161_v44 }
 0x490   : > { %1727 = vperm.xlu1 %2667, %v2746_v61   ;;  %1577 = vperm.xlu0 %2668, %v2734_v60   ;;  %v1674_v10 = vld [vmem:[#allocation4 + $0x60] sm:$0xff]  ;;  %v2748_v23 = vpop.eup %2747  ;;  %v1505_v60 = vld [vmem:[#allocation5 + $0x30] sm:$0xff] }
 0x491   : > { %1242 = vst.msk [vmem:[#allocation4 + $0x58] sm:$0xff] %vm478_vm4, %v1225_v18  ;;  %v2750_v6 = vpop.eup %2749  ;;  %2755 = vrcp.f32 %v1674_v10  ;;  %v1211_v26 = vmul.f32 %v2748_v23, %v1195_v21 }
 0x492   : > { %v2752_v8 = vpop.eup %2751 }
 0x493   : > { %v1213_v37 = vmul.f32 %v2752_v8, %v1197_v31  ;;  %v2754_v16 = vpop.eup %2753 }
 0x494   : > { %v1671_v0 = vld [vmem:[#allocation4 + $0x48] sm:$0xff]  ;;  %1582 = vperm.xlu1 %2667, %v2748_v23   ;;  %1752 = vperm.xlu0 %2668, %v2750_v6   ;;  %v1507_v23 = vld [vmem:[#allocation5 + $0x40] sm:$0xff] }
 0x495   : > { %2757 = vrcp.f32 %v1671_v0  ;;  %v1508_v6 = vld [vmem:[#allocation5 + $0x48] sm:$0xff] }
 0x496   : > { %v1167_v1 = vpop.xlane.xlu0 %1166  ;;  %2759 = vrcp.f32 %v1676_v35 }
 0x497   : > { %v1227_v7 = vadd.f32 %v1211_v26, %v1167_v1 }
 0x498   : > { %v1673_v19 = vld [vmem:[#allocation4 + $0x58] sm:$0xff]  ;;  %1592 = vperm.xlu1 %2667, %v2752_v8   ;;  %1587 = vperm.xlu0 %2668, %v3919_v50   ;;  %v1548_v50 = vpop.permute.xlu1 %1547 }
 0x499   : > { %2761 = vrcp.f32 %v1673_v19  ;;  %1244 = vst.msk [vmem:[#allocation4 + $0x68] sm:$0xff] %vm478_vm4, %v1227_v7  ;;  %v1601_v3 = vmul.f32 %v1548_v50, %v1505_v60 }
 0x49a   : > { %v1173_v51 = vpop.xlane.xlu0 %1172 }
 0x49b   : > { %v1229_v25 = vadd.f32 %v1213_v37, %v1173_v51  ;;  %v2756_v49 = vpop.eup %2755 }
 0x49c   : > { %1762 = vperm.xlu0 %2668, %v2754_v16   ;;  %v1553_v58 = vpop.permute.xlu1 %1552 }
 0x49d   : > { %1246 = vst.msk [vmem:[#allocation4 + $0x78] sm:$0xff] %vm478_vm4, %v1229_v25  ;;  %v1602_v45 = vmul.f32 %v1553_v58, %v1506_v34  ;;  %v1884_v34 = vsel %vm1824_vm5, %v3939_v15, 0  ;;  %v1511_v15 = vld [vmem:[#allocation5 + $0x60] sm:$0xff] }
 0x49f   : > { %v2758_v27 = vpop.eup %2757 }
 0x4a0   : > { %v1675_v28 = vld [vmem:[#allocation4 + $0x68] sm:$0xff]  ;;  %1757 = vperm.xlu1 %2667, %v2758_v27   ;;  %1772 = vperm.xlu0 %2668, %v2756_v49   ;;  %v2760_v29 = vpop.eup %2759  ;;  %v1523_v59 = vpop.permute.xlu1 %1522 }
 0x4a1   : > { %2763 = vrcp.f32 %v1675_v28  ;;  %v1596_v4 = vmul.f32 %v1523_v59, %v1500_v47 }
 0x4a2   : > { %v1543_v12 = vpop.permute.xlu0 %1542 }
 0x4a3   : > { %v2762_v39 = vpop.eup %2761  ;;  %v1600_v11 = vmul.f32 %v1543_v12, %v1504_v52  ;;  %v1816_v52 = vld [vmem:[%s3463_s25 + $0x8] sm:$0xf] }
 0x4a4   : > { %v1677_v38 = vld [vmem:[#allocation4 + $0x78] sm:$0xff]  ;;  %1767 = vperm.xlu1 %2667, %v2762_v39   ;;  %1782 = vperm.xlu0 %2668, %v2760_v29   ;;  %v1533_v57 = vpop.permute.xlu1 %1532 }
 0x4a5   : > { %2765 = vrcp.f32 %v1677_v38  ;;  %v1598_v9 = vmul.f32 %v1533_v57, %v1502_v24 }
 0x4a6   : > { %v1518_v53 = vpop.permute.xlu0 %1517 }
 0x4a7   : > { %v1595_v56 = vmul.f32 %v1518_v53, %v1499_v30 }
 0x4a8   : > { %v1563_v0 = vpop.permute.xlu1 %1562 }
 0x4a9   : > { %v1604_v1 = vmul.f32 %v1563_v0, %v1508_v6 }
 0x4aa   : > { %v1528_v42 = vpop.permute.xlu0 %1527 }
 0x4ab   : > { %v2764_v46 = vpop.eup %2763  ;;  %v1597_v62 = vmul.f32 %v1528_v42, %v1501_v33  ;;  %v1509_v33 = vld [vmem:[#allocation5 + $0x50] sm:$0xff] }
 0x4ac   : > { %1777 = vperm.xlu1 %2667, %v2764_v46  }
 0x4ae   : > { %v1558_v21 = vpop.permute.xlu0 %1557 }
 0x4af   : > { %v2766_v20 = vpop.eup %2765  ;;  %v1603_v26 = vmul.f32 %v1558_v21, %v1507_v23  ;;  %v1514_v23 = vld [vmem:[#allocation5 + $0x78] sm:$0xff]  ;;  %v1513_v21 = vld [vmem:[#allocation5 + $0x70] sm:$0xff] }
 0x4b0   : > { %1787 = vperm.xlu1 %2667, %v2766_v20  }
 0x4c1   : > { %v2438_v40 = vpop.f32.mrb[4].mxu0 }
 0x4c2   : > { %v1613_v5 = vadd.f32 %v2438_v40, %v1597_v62  ;;  %v1295_v54 = vpop.f32.mrb[5].mxu0  ;;  %v2446_v43 = vpop.f32.mrb[12].mxu1 }
 0x4c3   : > { %v1611_v36 = vadd.f32 %v1595_v56, %v1295_v54  ;;  %v1617_v48 = vadd.f32 %v2446_v43, %v1601_v3  ;;  %v2439_v63 = vpop.f32.mrb[6].mxu0  ;;  %v1358_v14 = vpop.f32.mrb[13].mxu1  ;;  %v1510_v56 = vld [vmem:[#allocation5 + $0x58] sm:$0xff] }
 0x4c4   : > { %1629 = vst.msk [vmem:[#allocation5 + $0x10] sm:$0xff] %vm511_vm2, %v1613_v5  ;;  %v1614_v17 = vadd.f32 %v2439_v63, %v1598_v9  ;;  %v1615_v22 = vadd.f32 %v1599_v13, %v1358_v14  ;;  %v1298_v2 = vpop.f32.mrb[7].mxu0  ;;  %v2447_v44 = vpop.f32.mrb[14].mxu1 }
 0x4c5   : > { %1627 = vst.msk [vmem:[#allocation5] sm:$0xff] %vm511_vm2, %v1611_v36  ;;  %1633 = vst.msk [vmem:[#allocation5 + $0x30] sm:$0xff] %vm511_vm2, %v1617_v48  ;;  %v1612_v55 = vadd.f32 %v1596_v4, %v1298_v2  ;;  %v1618_v61 = vadd.f32 %v2447_v44, %v1602_v45  ;;  %v1361_v18 = vpop.f32.mrb[15].mxu1 }
 0x4c6   : > { %1630 = vst.msk [vmem:[#allocation5 + $0x18] sm:$0xff] %vm511_vm2, %v1614_v17  ;;  %1631 = vst.msk [vmem:[#allocation5 + $0x20] sm:$0xff] %vm511_vm2, %v1615_v22  ;;  %v1616_v10 = vadd.f32 %v1600_v11, %v1361_v18  ;;  %v1512_v17 = vld [vmem:[#allocation5 + $0x68] sm:$0xff] }
 0x4c7   : > { %1628 = vst.msk [vmem:[#allocation5 + $0x8] sm:$0xff] %vm511_vm2, %v1612_v55  ;;  %1634 = vst.msk [vmem:[#allocation5 + $0x38] sm:$0xff] %vm511_vm2, %v1618_v61  ;;  %v1942_v61 = vsel %vm1824_vm5, %v1816_v52, 0 }
 0x4c8   : > { %1632 = vst.msk [vmem:[#allocation5 + $0x28] sm:$0xff] %vm511_vm2, %v1616_v10  ;;  %v1817_v10 = vld [vmem:[%s3463_s25 + $0xc] sm:$0xf] }
 0x4cb   : > { %v1696_v45 = vld [vmem:[#allocation5 + $0x10] sm:$0xff] }
 0x4cc   : > { %v1700_v12 = vld [vmem:[#allocation5 + $0x30] sm:$0xff]  ;;  %v1694_v30 = vld [vmem:[#allocation5] sm:$0xff] }
 0x4cd   : > { %v1698_v41 = vld [vmem:[#allocation5 + $0x20] sm:$0xff]  ;;  %v1697_v4 = vld [vmem:[#allocation5 + $0x18] sm:$0xff] }
 0x4ce   : > { %v1701_v39 = vld [vmem:[#allocation5 + $0x38] sm:$0xff]  ;;  %v1695_v32 = vld [vmem:[#allocation5 + $0x8] sm:$0xff] }
 0x4cf   : > { %v1699_v46 = vld [vmem:[#allocation5 + $0x28] sm:$0xff] }
 0x4da   : > { %v2454_v35 = vpop.f32.mrb[8].mxu0 }
 0x4db   : > { %v1421_v8 = vpop.f32.mrb[9].mxu0 }
 0x4dc   : > { %v1619_v31 = vadd.f32 %v1603_v26, %v1421_v8  ;;  %v2455_v7 = vpop.f32.mrb[10].mxu0 }
 0x4dd   : > { %v1424_v19 = vpop.f32.mrb[11].mxu0 }
 0x4de   : > { %1635 = vst.msk [vmem:[#allocation5 + $0x40] sm:$0xff] %vm511_vm2, %v1619_v31  ;;  %v1620_v37 = vadd.f32 %v1604_v1, %v1424_v19 }
 0x4e0   : > { %1636 = vst.msk [vmem:[#allocation5 + $0x48] sm:$0xff] %vm511_vm2, %v1620_v37 }
 0x4e2   : > { %v3957_v51 = vpop.f32.mrb[16].mxu1 }
 0x4e3   : > { %v1484_v16 = vpop.f32.mrb[17].mxu1 }
 0x4e4   : > { %v3959_v25 = vpop.f32.mrb[18].mxu1 }
 0x4e5   : > { %v1487_v49 = vpop.f32.mrb[19].mxu1 }
 0x4e7   : > { %v1703_v19 = vld [vmem:[#allocation5 + $0x48] sm:$0xff] }
 0x4fb   : > { %v1743_v27 = vpop.permute.xlu0 %1742 }
 0x4fc   : > { %v1796_v59 = vmul.f32 %v1743_v27, %v1700_v12 }
 0x4ff   : > { %v1748_v28 = vpop.permute.xlu1 %1747  ;;  %v1733_v29 = vpop.permute.xlu0 %1732 }
 0x500   : > { %v1797_v38 = vmul.f32 %v1748_v28, %v1701_v39  ;;  %v1794_v58 = vmul.f32 %v1733_v29, %v1698_v41 }
 0x502   : > { %v1809_v60 = vpack.c.bf16 %v1797_v38, %v1796_v59 }
 0x503   : > { %v1738_v50 = vpop.permute.xlu1 %1737  ;;  %v1713_v20 = vpop.permute.xlu0 %1712 }
 0x504   : > { %v1795_v53 = vmul.f32 %v1738_v50, %v1699_v46  ;;  %v1790_v47 = vmul.f32 %v1713_v20, %v1694_v30 }
 0x506   : > { %v1808_v42 = vpack.c.bf16 %v1795_v53, %v1794_v58 }
 0x507   : > { %v1718_v24 = vpop.permute.xlu1 %1717  ;;  %v1568_v57 = vpop.permute.xlu0 %1567 }
 0x508   : > { %v1791_v62 = vmul.f32 %v1718_v24, %v1695_v32  ;;  %v1605_v3 = vmul.f32 %v1568_v57, %v1509_v33  ;;  %2466 = vmatprep.mubr.msk.bf16.mxu0 %vm511_vm2, %v1808_v42 }
 0x509   : > { %2467 = vmatmul.mubr.msk.bf16.vlgmr.msra.gmra.mrb[12].mxu0 %vm511_vm2, %v1809_v60 }
 0x50a   : > { %v1806_v40 = vpack.c.bf16 %v1791_v62, %v1790_v47  ;;  %v1621_v13 = vadd.f32 %v2454_v35, %v1605_v3  ;;  %2471 = vmatpush3.bf16.msra.mxu0 %v1884_v34  ;;  %v2061_v47 = vld [vmem:[#allocation6 + $0x10] sm:$0xff]  ;;  %v2059_v62 = vld [vmem:[#allocation6] sm:$0xff] }
 0x50b   : > { %v1573_v9 = vpop.permute.xlu1 %1572  ;;  %v1723_v5 = vpop.permute.xlu0 %1722  ;;  %2510 = vmatprep.subr.msk.bf16.mxu0 %vm1824_vm5, %v1816_v52  ;;  %v2062_v52 = vld [vmem:[#allocation6 + $0x18] sm:$0xff] }
 0x50c   : > { %1637 = vst.msk [vmem:[#allocation5 + $0x50] sm:$0xff] %vm511_vm2, %v1621_v13  ;;  %v1606_v54 = vmul.f32 %v1573_v9, %v1510_v56  ;;  %2472 = vmatprep.mubr.msk.bf16.mxu0 %vm511_vm2, %v1806_v40  ;;  %v1792_v63 = vmul.f32 %v1723_v5, %v1696_v45  ;;  %v2060_v13 = vld [vmem:[#allocation6 + $0x8] sm:$0xff] }
 0x50e   : > { %v1622_v43 = vadd.f32 %v2455_v7, %v1606_v54  ;;  %v1702_v7 = vld [vmem:[#allocation5 + $0x40] sm:$0xff] }
 0x50f   : > { %v1728_v36 = vpop.permute.xlu1 %1727  ;;  %v1578_v48 = vpop.permute.xlu0 %1577 }
 0x510   : > { %1638 = vst.msk [vmem:[#allocation5 + $0x58] sm:$0xff] %vm511_vm2, %v1622_v43  ;;  %v1793_v14 = vmul.f32 %v1728_v36, %v1697_v4  ;;  %v1607_v11 = vmul.f32 %v1578_v48, %v1511_v15 }
 0x512   : > { %v1807_v22 = vpack.c.bf16 %v1793_v14, %v1792_v63  ;;  %v1623_v2 = vadd.f32 %v1607_v11, %v1484_v16 }
 0x513   : > { %v1583_v44 = vpop.permute.xlu1 %1582  ;;  %v1753_v55 = vpop.permute.xlu0 %1752  ;;  %v1704_v29 = vld [vmem:[#allocation5 + $0x50] sm:$0xff] }
 0x514   : > { %1639 = vst.msk [vmem:[#allocation5 + $0x60] sm:$0xff] %vm511_vm2, %v1623_v2  ;;  %v1608_v18 = vmul.f32 %v1583_v44, %v1512_v17  ;;  %v1798_v16 = vmul.f32 %v1753_v55, %v1702_v7 }
 0x515   : > { %2473 = vmatmul.mubr.msk.bf16.vlgmr.msra.gmra.mrb[12].mxu0 %vm511_vm2, %v1807_v22 }
 0x516   : > { %v1624_v6 = vadd.f32 %v1608_v18, %v1487_v49  ;;  %2477 = vmatpush3.bf16.msra.mxu0 %v1942_v61 }
 0x517   : > { %v1593_v0 = vpop.permute.xlu1 %1592  ;;  %v1588_v26 = vpop.permute.xlu0 %1587  ;;  %2511 = vmatprep.subr.msk.bf16.mxu0 %vm1824_vm5, %v1817_v10  ;;  %v1705_v39 = vld [vmem:[#allocation5 + $0x58] sm:$0xff] }
 0x518   : > { %1640 = vst.msk [vmem:[#allocation5 + $0x68] sm:$0xff] %vm511_vm2, %v1624_v6  ;;  %v1610_v35 = vmul.f32 %v1593_v0, %v1514_v23  ;;  %v1609_v8 = vmul.f32 %v1588_v26, %v1513_v21 }
 0x51a   : > { %v1626_v1 = vadd.f32 %v3959_v25, %v1610_v35  ;;  %v1625_v31 = vadd.f32 %v3957_v51, %v1609_v8  ;;  %v2004_v51 = vsel %vm1824_vm5, %v1817_v10, 0 }
 0x51b   : > { %v1763_v27 = vpop.permute.xlu0 %1762  ;;  %v1706_v20 = vld [vmem:[#allocation5 + $0x60] sm:$0xff] }
 0x51c   : > { %1642 = vst.msk [vmem:[#allocation5 + $0x78] sm:$0xff] %vm511_vm2, %v1626_v1  ;;  %1641 = vst.msk [vmem:[#allocation5 + $0x70] sm:$0xff] %vm511_vm2, %v1625_v31  ;;  %v1800_v41 = vmul.f32 %v1763_v27, %v1704_v29 }
 0x51f   : > { %v1758_v37 = vpop.permute.xlu1 %1757  ;;  %v1773_v50 = vpop.permute.xlu0 %1772  ;;  %v1707_v12 = vld [vmem:[#allocation5 + $0x68] sm:$0xff] }
 0x520   : > { %v1799_v49 = vmul.f32 %v1758_v37, %v1703_v19  ;;  %v1802_v53 = vmul.f32 %v1773_v50, %v1706_v20 }
 0x522   : > { %v1810_v28 = vpack.c.bf16 %v1799_v49, %v1798_v16 }
 0x523   : > { %v1768_v38 = vpop.permute.xlu1 %1767  ;;  %v1708_v33 = vld [vmem:[#allocation5 + $0x70] sm:$0xff]  ;;  %v1783_v42 = vpop.permute.xlu0 %1782  ;;  %v1709_v30 = vld [vmem:[#allocation5 + $0x78] sm:$0xff] }
 0x524   : > { %v1801_v46 = vmul.f32 %v1768_v38, %v1705_v39  ;;  %2478 = vmatprep.mubr.msk.bf16.mxu0 %vm511_vm2, %v1810_v28  ;;  %v1804_v24 = vmul.f32 %v1783_v42, %v1708_v33 }
 0x526   : > { %v1811_v25 = vpack.c.bf16 %v1801_v46, %v1800_v41 }
 0x528   : > { %2479 = vmatmul.mubr.msk.bf16.vlgmr.msra.gmra.mrb[12].mxu0 %vm511_vm2, %v1811_v25 }
 0x529   : > { %2483 = vmatpush3.bf16.msra.mxu0 %v2004_v51 }
 0x52b   : > { %v1778_v58 = vpop.permute.xlu1 %1777 }
 0x52c   : > { %v1803_v59 = vmul.f32 %v1778_v58, %v1707_v12 }
 0x52e   : > { %v1812_v60 = vpack.c.bf16 %v1803_v59, %v1802_v53 }
 0x52f   : > { %v1788_v32 = vpop.permute.xlu1 %1787 }
 0x530   : > { %v1805_v57 = vmul.f32 %v1788_v32, %v1709_v30  ;;  %2484 = vmatprep.mubr.msk.bf16.mxu0 %vm511_vm2, %v1812_v60 }
 0x532   : > { %v1813_v34 = vpack.c.bf16 %v1805_v57, %v1804_v24 }
 0x534   : > { %2485 = vmatmul.mubr.msk.bf16.vlgmr.msra.gmra.mrb[12].mxu0 %vm511_vm2, %v1813_v34 }
 0x607   : > { %v2486_v3 = vpop.f32.mrb[12].mxu0  ;;  %2075 = sbr.rel (!%p2071_p4) target bundleno = 1558 (0x616), region = 68 }
 0x608   : > { %v2065_v56 = vadd.f32 %v2486_v3, %v2061_v47  ;;  %v2040_v40 = vpop.f32.mrb[13].mxu0 }
 0x609   : > { %v2063_v9 = vadd.f32 %v2059_v62, %v2040_v40  ;;  %v2487_v5 = vpop.f32.mrb[14].mxu0 }
 0x60a   : > { %2069 = vst.msk [vmem:[#allocation6 + $0x10] sm:$0xff] %vm885_vm3, %v2065_v56  ;;  %v2066_v54 = vadd.f32 %v2487_v5, %v2062_v52  ;;  %v2043_v15 = vpop.f32.mrb[15].mxu0 }
 0x60b   : > { %2067 = vst.msk [vmem:[#allocation6] sm:$0xff] %vm885_vm3, %v2063_v9  ;;  %v2064_v43 = vadd.f32 %v2060_v13, %v2043_v15 }
 0x60c   : > { %2070 = vst.msk [vmem:[#allocation6 + $0x18] sm:$0xff] %vm885_vm3, %v2066_v54 }
 0x60d   : > { %2068 = vst.msk [vmem:[#allocation6 + $0x8] sm:$0xff] %vm885_vm3, %v2064_v43 }
 0x611   : > { %v2078_v36 = vld [vmem:[#allocation6 + $0x10] sm:$0xff] }
 0x612   : > { %v2076_v45 = vld [vmem:[#allocation6] sm:$0xff]  ;;  %2082 = vst.msk [vmem:[%s3471_s15 + $0x10] sm:$0xff] %vm885_vm3, %v2078_v36 }
 0x613   : > { %2080 = vst.msk [vmem:[%s3471_s15] sm:$0xff] %vm885_vm3, %v2076_v45  ;;  %v2079_v48 = vld [vmem:[#allocation6 + $0x18] sm:$0xff] }
 0x614   : > { %v2077_v4 = vld [vmem:[#allocation6 + $0x8] sm:$0xff]  ;;  %2083 = vst.msk [vmem:[%s3471_s15 + $0x18] sm:$0xff] %vm885_vm3, %v2079_v48 }
 0x615   : > { %2081 = vst.msk [vmem:[%s3471_s15 + $0x8] sm:$0xff] %vm885_vm3, %v2077_v4 }
 0x616 PF: > { %s4169_s12 = sld [smem:[#allocation24_spill]]  ;;  %s4170_s11 = sld [smem:[#allocation33_spill]] }
 0x617   : > { %s2100_s18 = sshll.u32 %s3471_s15, 4  ;;  %s2085_s5 = scalar_lea.sflag [#allocation9], %s3444_s24  ;;  %s4007_s18 = int_to_ptr.vmem [resolvable:$true] %s2100_s18 }
 0x618   : > { %s2887_s25 = scalar_lea.vmem %s4007_s18, 512  ;;  %p4171_p3 = scmp.ne.s32.totalorder %s4135_s14, 0 }
 0x619   : > { %p2888_p11 = scmp.ne.s32.totalorder %s4007_s18, %s2887_s25  ;;  %s3059_s29 = smov [#allocation15]  }
 0x61a   : > { %s2891_s4 = sshll.u32 %s3059_s29, 4  ;;  %s2892_s4 = int_to_ptr.vmem [resolvable:$false] %s2891_s4 }
 0x61b   : > { %p2889_p5 = pnand %p2888_p11, %p4171_p3  ;;  %s2893_s20 = scalar_lea.vmem %s2892_s4, 1024 }
 0x61c   : > { %s2355_s8 = sshll.u32 %s4169_s12, 9  ;;  %p2894_p2 = scmp.lt.s32.totalorder %s4007_s18, %s2892_s4 }
 0x61d   : > { %s4004_s9 = scalar_lea.hbm %s4170_s11, %s2355_s8  ;;  %p2890_p10 = pneg %p2889_p5 }
 0x61e   : > { %p2895_p9 = scmp.lt.s32.totalorder %s2893_s20, %s2887_s25 }
 0x620   : > { %p2896_p12 = por %p2895_p9, %p2894_p2 }
 0x622   : > { %p2897_p0 = pnand %p2896_p12, %p2890_p10 }
 0x624   : > { %2900 = shalt.err (!%p2897_p0)
}
 0x625   : > { %s2901_s15 = scalar_lea.hbm %s4004_s9, 512  ;;  %s2905_s21 = scalar_lea.hbm %s4170_s11, 1024 }
 0x626   : > { %p2902_p1 = scmp.ne.s32.totalorder %s4004_s9, %s2901_s15  ;;  %p2906_p6 = scmp.lt.u32.totalorder %s4004_s9, %s4170_s11 }
 0x627   : > { %p2907_p13 = scmp.lt.u32.totalorder %s2905_s21, %s2901_s15  ;;  %p2909_p11 = scmp.lt.u32.totalorder %s2901_s15, %s4004_s9 }
 0x628   : > { %p2903_p8 = pnand %p2902_p1, %p4171_p3 }
 0x629   : > { %p2908_p4 = por %p2907_p13, %p2906_p6 }
 0x62a   : > { %p2904_p7 = pneg %p2903_p8 }
 0x62b   : > { %p2910_p5 = por %p2909_p11, %p2908_p4 }
 0x62d   : > { %p2911_p10 = pnand %p2910_p5, %p2904_p7 }
 0x62f   : > { %2914 = shalt.err (!%p2911_p10)
}
 0x630   : > { %s3060_s13 = smov 128   ;;  %s3061_s12 = smov 8  }
 0x631   : > { %2520 = dma.vmem_to_hbm [thread:$0]  (%p4171_p3), %s4007_s18, 512, %s4004_s9, %s2085_s5, %s3060_s13, %s3060_s13, %s3061_s12  }
 0x632 PF: > { %s4172_s8 = sld [smem:[#allocation22_spill]]  ;;  %s4173_s6 = sld [smem:[#allocation30_spill]] }
 0x633   : > { %p2540_p2 = scmp.ge.s32.totalorder %s3041_s28, 2 }
 0x638   : > { %s2115_s1 = sand.u32 1, %s4172_s8   ;;  %p4174_p9 = scmp.ne.s32.totalorder %s4173_s6, 0 }
 0x639   : > { %s2116_s25 = scalar_lea.sflag [#allocation9], %s2115_s1 }
 0x63a   : > { %p2536_p12 = pnand %p2540_p2, %p4174_p9 }
 0x63c   : > { %2984 = dma.done.wait (!%p2536_p12), %s2116_s25, 512  }
 0x63d   : > { %2986 = vsyncadd (!%p2536_p12), %s2116_s25, 4294966784  ;;  %s26_s28 = sadd.s32 1, %s3041_s28   ;;  %s4176_s18 = sld [smem:[#allocation20_spill]] }
 0x63e   : > { %p4038_p0 = scmp.ge.s32.totalorder %s26_s28, 6   ;;  %s4177_s14 = sld [smem:[#allocation21_spill]] }
 0x63f   : > { %s4178_s20 = sld [smem:[#allocation28_spill]]  ;;  %s4179_s24 = sld [smem:[#allocation29_spill]] }
 0x640   : > { %s4180_s9 = sld [smem:[#allocation25_spill]]  ;;  %s4181_s5 = sld [smem:[#allocation26_spill]] }
 0x641   : > { %s4182_s15 = smov %s2993_s16  ;;  %s4183_s16 = smov %s2997_s17 }
 0x642   : > { %s4184_s17 = smov %s3381_s19  ;;  %s4186_s21 = smov %s3017_s22 }
 0x643   : > { %s4187_s22 = smov %s3021_s23  ;;  %s4190_s25 = smov %s3037_s27 }
 0x644   : > { %s4185_s19 = smov %s4177_s14  ;;  %25 = sbr.rel (!%p4038_p0) target bundleno = 18 (0x12), region = 134 }
 0x645   : > { %s4188_s23 = smov %s4179_s24  ;;  %s4189_s24 = smov %s3033_s26 }
 0x646   : > { %s4191_s26 = smov %s4180_s9  ;;  %s4192_s27 = smov %s4181_s5 }
 0x64b   :  { %2121 = vsyncpa [#allocation8], 1 }
 0x64c   :  { %2123 = vsyncpa [#allocation8 + $0x1], 1 }
 0x64d   :  { %2124 = vsyncpa [#allocation11], 1 }
 0x64e   :  { %2126 = vsyncpa [#allocation11 + $0x1], 1 }
 0x64f   :  { %2127 = vsyncpa [#allocation14], 1 }
 0x650   :  { %2129 = vsyncpa [#allocation14 + $0x1], 1 }
 0x651   :  { %2130 = vsyncpa [#allocation9], 1 }
 0x652   :  { %2132 = vsyncpa [#allocation9 + $0x1], 1 }

</bundles_post_ra>
